<compile_context>
chip_gen: v7x
topology: tpu7x:2x2x1
jax: 0.10.0
libtpu: 0.0.40
codegen_flags: <defaults>
</compile_context>

<pallas_src>
import functools

import jax
import jax.numpy as jnp
from jax.experimental import pallas as pl
from jax.experimental.pallas import tpu as pltpu


def _round_up(n, m):
    return (n + m - 1) // m * m


def _vae_kernel(
    x_ref, y_ref, eps_ref,
    w1f_ref, b1f_ref, w2f_ref, b2f_ref,   # fused encoder (mean + logvar heads)
    wd1_ref, wd2_ref, bd2_ref,            # decoder
    out_ref,                              # (TB, slab_cols) packed output slab
    *, eta_prior_sq, latent_dim, target_dim, used_cols, slab_cols,
):
    L, T = latent_dim, target_dim
    x = x_ref[...]
    tb = x.shape[0]
    mm = w1f_ref.dtype   # matmul-operand dtype (f32 or bf16); accumulation is f32

    # ---- fused encoder: [h_mean | h_logvar] in a single matmul each layer ----
    h = jnp.maximum(
        jnp.dot(x.astype(mm), w1f_ref[...], preferred_element_type=jnp.float32)
        + b1f_ref[...], 0.0)
    ml = (jnp.dot(h.astype(mm), w2f_ref[...], preferred_element_type=jnp.float32)
          + b2f_ref[...])
    mu = ml[:, :L]
    logvar = ml[:, L:]

    sigma = jnp.exp(logvar * 0.5)          # f32 elementwise / EUP
    z = mu + sigma * eps_ref[...]

    # ---- decoder ----
    hd = jnp.maximum(
        jnp.dot(z.astype(mm), wd1_ref[...], preferred_element_type=jnp.float32),
        0.0)
    y_pred = (jnp.dot(hd.astype(mm), wd2_ref[...],
                      preferred_element_type=jnp.float32) + bd2_ref[...])

    # ---- per-row loss partials (batch mean / beta scaling done in wrapper
    #      so the batch grid axis carries no cross-step state) ----
    diff = y_ref[...] - y_pred
    rec_per = jnp.sum(diff * diff, axis=-1, keepdims=True)            # (TB, 1)
    s2 = (sigma * sigma) / eta_prior_sq
    kl_per = 0.5 * (
        -jnp.sum(jnp.log(s2), axis=-1, keepdims=True)
        - float(L)
        + jnp.sum(mu * mu, axis=-1, keepdims=True) / eta_prior_sq
        + jnp.sum(s2, axis=-1, keepdims=True))                        # (TB, 1)

    # ---- pack everything into one lane-dense output slab ----
    out_ref[:, 0:L] = z
    out_ref[:, L:2 * L] = mu
    out_ref[:, 2 * L:3 * L] = sigma
    out_ref[:, 3 * L:3 * L + T] = y_pred
    out_ref[:, 3 * L + T:3 * L + T + 1] = rec_per
    out_ref[:, 3 * L + T + 1:used_cols] = kl_per
    if slab_cols > used_cols:   # static: initialize the lane padding
        out_ref[:, used_cols:slab_cols] = jnp.zeros(
            (tb, slab_cols - used_cols), jnp.float32)


def tanh_beta_vae_forward(x, y, eps, params, *, eta_dec_sq, eta_prior_sq, beta,
                          block_batch=512, matmul_dtype=jnp.float32):
    (w1m, w2m, b2m, w1l, b1l, w2l, b2l, wd1, wd2, bd2) = params
    batch, input_dim = x.shape
    hidden = w1m.shape[1]
    latent = w2m.shape[1]
    target = wd2.shape[1]

    # ---- fuse encoder heads once on the host (no in-kernel reshapes/concats) ----
    w1f = jnp.concatenate([w1m, w1l], axis=1)                              # (in, 2H)
    b1f = jnp.concatenate([jnp.zeros((1, hidden), jnp.float32), b1l], 1)    # (1, 2H)
    w2f = jnp.zeros((2 * hidden, 2 * latent), jnp.float32)
    w2f = w2f.at[:hidden, :latent].set(w2m).at[hidden:, latent:].set(w2l)   # blk-diag
    b2f = jnp.concatenate([b2m, b2l], axis=1)                               # (1, 2L)

    w1f = w1f.astype(matmul_dtype)
    w2f = w2f.astype(matmul_dtype)
    wd1c = wd1.astype(matmul_dtype)
    wd2c = wd2.astype(matmul_dtype)

    # ---- batch tiling: pad rows so the grid divides evenly ----
    tb = min(_round_up(block_batch, 8), _round_up(batch, 8))
    padded = _round_up(batch, tb)
    num_tiles = padded // tb
    if padded != batch:
        pr = padded - batch
        x = jnp.pad(x, ((0, pr), (0, 0)))
        y = jnp.pad(y, ((0, pr), (0, 0)))
        eps = jnp.pad(eps, ((0, pr), (0, 0)))

    # ---- lane-dense output slab: z | mu | sigma | y_pred | rec | kl | pad ----
    used_cols = 3 * latent + target + 2
    slab_cols = _round_up(used_cols, 128)

    kernel = functools.partial(
        _vae_kernel,
        eta_prior_sq=float(eta_prior_sq),
        latent_dim=latent, target_dim=target,
        used_cols=used_cols, slab_cols=slab_cols)

    weight_args = (w1f, b1f, w2f, b2f, wd1c, wd2c, bd2)
    weight_specs = [pl.BlockSpec(w.shape, lambda i: (0, 0)) for w in weight_args]

    flops = 2 * padded * (input_dim * 2 * hidden + 2 * hidden * 2 * latent
                          + latent * hidden + hidden * target)
    bytes_accessed = (
        4 * padded * (input_dim + target + latent + slab_cols)
        + sum(int(w.size) * w.dtype.itemsize for w in weight_args))

    slab = pl.pallas_call(
        kernel,
        out_shape=jax.ShapeDtypeStruct((padded, slab_cols), jnp.float32),
        grid=(num_tiles,),
        in_specs=[
            pl.BlockSpec((tb, input_dim), lambda i: (i, 0)),   # x
            pl.BlockSpec((tb, target), lambda i: (i, 0)),      # y
            pl.BlockSpec((tb, latent), lambda i: (i, 0)),      # eps
            *weight_specs,                                     # resident weights
        ],
        out_specs=pl.BlockSpec((tb, slab_cols), lambda i: (i, 0)),
        compiler_params=pltpu.CompilerParams(
            dimension_semantics=("parallel",)),
        cost_estimate=pl.CostEstimate(
            flops=flops,
            transcendentals=2 * padded * latent,
            bytes_accessed=bytes_accessed),
    )(x, y, eps, *weight_args)

    # ---- split slab and finish loss reductions (f32, outside the kernel) ----
    z = slab[:batch, 0:latent]
    mu = slab[:batch, latent:2 * latent]
    sigma = slab[:batch, 2 * latent:3 * latent]
    y_pred = slab[:batch, 3 * latent:3 * latent + target]
    rec_per = slab[:batch, 3 * latent + target]
    kl_per = slab[:batch, 3 * latent + target + 1]

    rec_loss = jnp.mean(rec_per) / eta_dec_sq / 2.0
    kl_loss = beta * jnp.mean(kl_per)
    loss = rec_loss + kl_loss

    return {
        "z": z, "mu": mu, "sigma": sigma, "y_pred": y_pred,
        "loss": loss, "rec_loss": rec_loss, "kl_loss": kl_loss,
    }


def _reference_forward(x, y, eps, params, *, eta_dec_sq, eta_prior_sq, beta):
    """Plain-JAX mirror of the PyTorch forward, for correctness checking."""
    (w1m, w2m, b2m, w1l, b1l, w2l, b2l, wd1, wd2, bd2) = params
    latent_dim = w2m.shape[1]
    mu = jnp.maximum(x @ w1m, 0.0) @ w2m + b2m
    logvar = jnp.maximum(x @ w1l + b1l, 0.0) @ w2l + b2l
    sigma = jnp.exp(logvar / 2.0)
    z = mu + sigma * eps
    y_pred = jnp.maximum(z @ wd1, 0.0) @ wd2 + bd2
    rec_loss = jnp.mean(jnp.sum((y - y_pred) ** 2, axis=-1)) / eta_dec_sq / 2.0
    s2 = sigma ** 2 / eta_prior_sq
    kl = 0.5 * jnp.mean(
        -jnp.sum(jnp.log(s2), axis=-1)
        - latent_dim
        + jnp.sum(mu ** 2, axis=-1) / eta_prior_sq
        + jnp.sum(s2, axis=-1))
    return rec_loss + beta * kl, rec_loss, beta * kl, y_pred, z, mu, sigma


if __name__ == "__main__":
    # Small shapes consistent with the module's Linear stacks.
    batch = 300            # not a multiple of the tile -> exercises padding path
    input_dim = 16
    latent_dim = 8
    target_dim = 8
    hidden_dim = 32
    eta_dec_sq = 0.5
    eta_prior_sq = 1.0
    beta = 2.0

    key = jax.random.PRNGKey(0)
    keys = jax.random.split(key, 16)

    def init(k, shape, scale=0.1):
        return (scale * jax.random.normal(k, shape)).astype(jnp.float32)

    # Weights stored as (in_features, out_features); biases as (1, out_features).
    params = (
        init(keys[0], (input_dim, hidden_dim)),    # w1m (no bias)
        init(keys[1], (hidden_dim, latent_dim)),   # w2m
        init(keys[2], (1, latent_dim)),            # b2m
        init(keys[3], (input_dim, hidden_dim)),    # w1l
        init(keys[4], (1, hidden_dim)),            # b1l
        init(keys[5], (hidden_dim, latent_dim)),   # w2l
        init(keys[6], (1, latent_dim)),            # b2l
        init(keys[7], (latent_dim, hidden_dim)),   # wd1 (no bias)
        init(keys[8], (hidden_dim, target_dim)),   # wd2
        init(keys[9], (1, target_dim)),            # bd2
    )

    x = jax.random.normal(keys[10], (batch, input_dim), dtype=jnp.float32)
    y = jax.random.normal(keys[11], (batch, target_dim), dtype=jnp.float32)
    eps = jax.random.normal(keys[12], (batch, latent_dim), dtype=jnp.float32)

    # f32 run (exact semantics), small tile so the grid actually has >1 step.
    out = tanh_beta_vae_forward(
        x, y, eps, params,
        eta_dec_sq=eta_dec_sq, eta_prior_sq=eta_prior_sq, beta=beta,
        block_batch=128, matmul_dtype=jnp.float32)
    jax.block_until_ready(out)

    ref_loss, ref_rec, ref_kl, ref_ypred, ref_z, ref_mu, ref_sigma = (
        _reference_forward(
            x, y, eps, params,
            eta_dec_sq=eta_dec_sq, eta_prior_sq=eta_prior_sq, beta=beta))

    assert jnp.allclose(out["loss"], ref_loss, atol=1e-4, rtol=1e-4)
    assert jnp.allclose(out["rec_loss"], ref_rec, atol=1e-4, rtol=1e-4)
    assert jnp.allclose(out["kl_loss"], ref_kl, atol=1e-4, rtol=1e-4)
    assert jnp.allclose(out["y_pred"], ref_ypred, atol=1e-4, rtol=1e-4)
    assert jnp.allclose(out["z"], ref_z, atol=1e-4, rtol=1e-4)
    assert jnp.allclose(out["mu"], ref_mu, atol=1e-4, rtol=1e-4)
    assert jnp.allclose(out["sigma"], ref_sigma, atol=1e-4, rtol=1e-4)

    # bf16 matmul-operand path (v6e/v7x MXU fast path) -- run to verify it
    # lowers and executes; numerics intentionally not strictly asserted.
    out_bf16 = tanh_beta_vae_forward(
        x, y, eps, params,
        eta_dec_sq=eta_dec_sq, eta_prior_sq=eta_prior_sq, beta=beta,
        block_batch=128, matmul_dtype=jnp.bfloat16)
    jax.block_until_ready(out_bf16)

    print("KERNEL_OK")
</pallas_src>

<mosaic_0001>
module attributes {stable_mosaic.version = 11 : i64} {
  func.func @_vae_kernel(%arg0: i32, %arg1: memref<128x16xf32, #tpu.memory_space<vmem>>, %arg2: memref<128x8xf32, #tpu.memory_space<vmem>>, %arg3: memref<128x8xf32, #tpu.memory_space<vmem>>, %arg4: memref<16x64xf32, #tpu.memory_space<vmem>>, %arg5: memref<1x64xf32, #tpu.memory_space<vmem>>, %arg6: memref<64x16xf32, #tpu.memory_space<vmem>>, %arg7: memref<1x16xf32, #tpu.memory_space<vmem>>, %arg8: memref<8x32xf32, #tpu.memory_space<vmem>>, %arg9: memref<32x8xf32, #tpu.memory_space<vmem>>, %arg10: memref<1x8xf32, #tpu.memory_space<vmem>>, %arg11: memref<128x128xf32, #tpu.memory_space<vmem>>) attributes {dimension_semantics = [#tpu.dimension_semantics<parallel>], iteration_bounds = array<i64: 3>, scalar_prefetch = 0 : i64, scratch_operands = 0 : i64, tpu.core_type = #tpu.core_type<tc>, window_params = [{transform_indices = @transform_0, window_bounds = array<i64: 128, 16>}, {transform_indices = @transform_1, window_bounds = array<i64: 128, 8>}, {transform_indices = @transform_2, window_bounds = array<i64: 128, 8>}, {pipeline_mode = #tpu.pipeline_mode<synchronous>, transform_indices = @transform_3, window_bounds = array<i64: 16, 64>}, {pipeline_mode = #tpu.pipeline_mode<synchronous>, transform_indices = @transform_4, window_bounds = array<i64: 1, 64>}, {pipeline_mode = #tpu.pipeline_mode<synchronous>, transform_indices = @transform_5, window_bounds = array<i64: 64, 16>}, {pipeline_mode = #tpu.pipeline_mode<synchronous>, transform_indices = @transform_6, window_bounds = array<i64: 1, 16>}, {pipeline_mode = #tpu.pipeline_mode<synchronous>, transform_indices = @transform_7, window_bounds = array<i64: 8, 32>}, {pipeline_mode = #tpu.pipeline_mode<synchronous>, transform_indices = @transform_8, window_bounds = array<i64: 32, 8>}, {pipeline_mode = #tpu.pipeline_mode<synchronous>, transform_indices = @transform_9, window_bounds = array<i64: 1, 8>}, {transform_indices = @transform_10, window_bounds = array<i64: 128, 128>}]} {
    %c0 = arith.constant 0 : index
    %c0_0 = arith.constant 0 : index
    %0 = vector.load %arg1[%c0, %c0_0] : memref<128x16xf32, #tpu.memory_space<vmem>>, vector<128x16xf32>
    %c0_1 = arith.constant 0 : index
    %c0_2 = arith.constant 0 : index
    %1 = vector.load %arg4[%c0_1, %c0_2] : memref<16x64xf32, #tpu.memory_space<vmem>>, vector<16x64xf32>
    %cst = arith.constant dense<0.000000e+00> : vector<128x64xf32>
    %2 = tpu.matmul %0, %1, %cst {dimension_numbers = #tpu.dot_dimension_numbers<[1], [0], [0], [1], [0, 0, 1, 1], [], []>} : vector<128x16xf32>, vector<16x64xf32>, vector<128x64xf32> -> vector<128x64xf32>
    %c0_3 = arith.constant 0 : index
    %c0_4 = arith.constant 0 : index
    %3 = vector.load %arg5[%c0_3, %c0_4] : memref<1x64xf32, #tpu.memory_space<vmem>>, vector<1x64xf32>
    %4 = vector.broadcast %3 : vector<1x64xf32> to vector<128x64xf32>
    %5 = arith.addf %2, %4 : vector<128x64xf32>
    %cst_5 = arith.constant 0.000000e+00 : f32
    %6 = vector.broadcast %cst_5 : f32 to vector<128x64xf32>
    %7 = arith.maximumf %5, %6 : vector<128x64xf32>
    %c0_6 = arith.constant 0 : index
    %c0_7 = arith.constant 0 : index
    %8 = vector.load %arg6[%c0_6, %c0_7] : memref<64x16xf32, #tpu.memory_space<vmem>>, vector<64x16xf32>
    %cst_8 = arith.constant dense<0.000000e+00> : vector<128x16xf32>
    %9 = tpu.matmul %7, %8, %cst_8 {dimension_numbers = #tpu.dot_dimension_numbers<[1], [0], [0], [1], [0, 0, 1, 1], [], []>} : vector<128x64xf32>, vector<64x16xf32>, vector<128x16xf32> -> vector<128x16xf32>
    %c0_9 = arith.constant 0 : index
    %c0_10 = arith.constant 0 : index
    %10 = vector.load %arg7[%c0_9, %c0_10] : memref<1x16xf32, #tpu.memory_space<vmem>>, vector<1x16xf32>
    %11 = vector.broadcast %10 : vector<1x16xf32> to vector<128x16xf32>
    %12 = arith.addf %9, %11 : vector<128x16xf32>
    %13 = vector.extract_strided_slice %12 {offsets = [0, 0], sizes = [128, 8], strides = [1, 1]} : vector<128x16xf32> to vector<128x8xf32>
    %14 = vector.extract_strided_slice %12 {offsets = [0, 8], sizes = [128, 8], strides = [1, 1]} : vector<128x16xf32> to vector<128x8xf32>
    %cst_11 = arith.constant 5.000000e-01 : f32
    %15 = vector.broadcast %cst_11 : f32 to vector<128x8xf32>
    %16 = arith.mulf %14, %15 : vector<128x8xf32>
    %17 = math.exp %16 : vector<128x8xf32>
    %c0_12 = arith.constant 0 : index
    %c0_13 = arith.constant 0 : index
    %18 = vector.load %arg3[%c0_12, %c0_13] : memref<128x8xf32, #tpu.memory_space<vmem>>, vector<128x8xf32>
    %19 = arith.mulf %17, %18 : vector<128x8xf32>
    %20 = arith.addf %13, %19 : vector<128x8xf32>
    %c0_14 = arith.constant 0 : index
    %c0_15 = arith.constant 0 : index
    %21 = vector.load %arg8[%c0_14, %c0_15] : memref<8x32xf32, #tpu.memory_space<vmem>>, vector<8x32xf32>
    %cst_16 = arith.constant dense<0.000000e+00> : vector<128x32xf32>
    %22 = tpu.matmul %20, %21, %cst_16 {dimension_numbers = #tpu.dot_dimension_numbers<[1], [0], [0], [1], [0, 0, 1, 1], [], []>} : vector<128x8xf32>, vector<8x32xf32>, vector<128x32xf32> -> vector<128x32xf32>
    %cst_17 = arith.constant 0.000000e+00 : f32
    %23 = vector.broadcast %cst_17 : f32 to vector<128x32xf32>
    %24 = arith.maximumf %22, %23 : vector<128x32xf32>
    %c0_18 = arith.constant 0 : index
    %c0_19 = arith.constant 0 : index
    %25 = vector.load %arg9[%c0_18, %c0_19] : memref<32x8xf32, #tpu.memory_space<vmem>>, vector<32x8xf32>
    %cst_20 = arith.constant dense<0.000000e+00> : vector<128x8xf32>
    %26 = tpu.matmul %24, %25, %cst_20 {dimension_numbers = #tpu.dot_dimension_numbers<[1], [0], [0], [1], [0, 0, 1, 1], [], []>} : vector<128x32xf32>, vector<32x8xf32>, vector<128x8xf32> -> vector<128x8xf32>
    %c0_21 = arith.constant 0 : index
    %c0_22 = arith.constant 0 : index
    %27 = vector.load %arg10[%c0_21, %c0_22] : memref<1x8xf32, #tpu.memory_space<vmem>>, vector<1x8xf32>
    %28 = vector.broadcast %27 : vector<1x8xf32> to vector<128x8xf32>
    %29 = arith.addf %26, %28 : vector<128x8xf32>
    %c0_23 = arith.constant 0 : index
    %c0_24 = arith.constant 0 : index
    %30 = vector.load %arg2[%c0_23, %c0_24] : memref<128x8xf32, #tpu.memory_space<vmem>>, vector<128x8xf32>
    %31 = arith.subf %30, %29 : vector<128x8xf32>
    %32 = arith.mulf %31, %31 : vector<128x8xf32>
    %cst_25 = arith.constant dense<0.000000e+00> : vector<128xf32>
    %33 = vector.multi_reduction <add>, %32, %cst_25 [1] : vector<128x8xf32> to vector<128xf32>
    %34 = vector.shape_cast %33 : vector<128xf32> to vector<128x1xf32>
    %35 = arith.mulf %17, %17 : vector<128x8xf32>
    %cst_26 = arith.constant 1.000000e+00 : f32
    %36 = vector.broadcast %cst_26 : f32 to vector<128x8xf32>
    %37 = arith.divf %35, %36 : vector<128x8xf32>
    %38 = math.log %37 : vector<128x8xf32>
    %cst_27 = arith.constant dense<0.000000e+00> : vector<128xf32>
    %39 = vector.multi_reduction <add>, %38, %cst_27 [1] : vector<128x8xf32> to vector<128xf32>
    %40 = vector.shape_cast %39 : vector<128xf32> to vector<128x1xf32>
    %cst_28 = arith.constant 0.000000e+00 : f32
    %41 = vector.broadcast %cst_28 : f32 to vector<128x1xf32>
    %42 = arith.subf %41, %40 : vector<128x1xf32>
    %cst_29 = arith.constant 8.000000e+00 : f32
    %43 = vector.broadcast %cst_29 : f32 to vector<128x1xf32>
    %44 = arith.subf %42, %43 : vector<128x1xf32>
    %45 = arith.mulf %13, %13 : vector<128x8xf32>
    %cst_30 = arith.constant dense<0.000000e+00> : vector<128xf32>
    %46 = vector.multi_reduction <add>, %45, %cst_30 [1] : vector<128x8xf32> to vector<128xf32>
    %47 = vector.shape_cast %46 : vector<128xf32> to vector<128x1xf32>
    %cst_31 = arith.constant 1.000000e+00 : f32
    %48 = vector.broadcast %cst_31 : f32 to vector<128x1xf32>
    %49 = arith.divf %47, %48 : vector<128x1xf32>
    %50 = arith.addf %44, %49 : vector<128x1xf32>
    %cst_32 = arith.constant dense<0.000000e+00> : vector<128xf32>
    %51 = vector.multi_reduction <add>, %37, %cst_32 [1] : vector<128x8xf32> to vector<128xf32>
    %52 = vector.shape_cast %51 : vector<128xf32> to vector<128x1xf32>
    %53 = arith.addf %50, %52 : vector<128x1xf32>
    %cst_33 = arith.constant 5.000000e-01 : f32
    %54 = vector.broadcast %cst_33 : f32 to vector<128x1xf32>
    %55 = arith.mulf %54, %53 : vector<128x1xf32>
    %c0_34 = arith.constant 0 : index
    %c0_35 = arith.constant 0 : index
    %56 = vector.load %arg11[%c0_34, %c0_35] : memref<128x128xf32, #tpu.memory_space<vmem>>, vector<128x8xf32>
    tpu.vector_store %arg11[%c0_34, %c0_35], %20 {strides = array<i32>} : memref<128x128xf32, #tpu.memory_space<vmem>>, vector<128x8xf32>,
    %c0_36 = arith.constant 0 : index
    %c8 = arith.constant 8 : index
    %57 = vector.load %arg11[%c0_36, %c8] : memref<128x128xf32, #tpu.memory_space<vmem>>, vector<128x8xf32>
    tpu.vector_store %arg11[%c0_36, %c8], %13 {strides = array<i32>} : memref<128x128xf32, #tpu.memory_space<vmem>>, vector<128x8xf32>,
    %c0_37 = arith.constant 0 : index
    %c16 = arith.constant 16 : index
    %58 = vector.load %arg11[%c0_37, %c16] : memref<128x128xf32, #tpu.memory_space<vmem>>, vector<128x8xf32>
    tpu.vector_store %arg11[%c0_37, %c16], %17 {strides = array<i32>} : memref<128x128xf32, #tpu.memory_space<vmem>>, vector<128x8xf32>,
    %c0_38 = arith.constant 0 : index
    %c24 = arith.constant 24 : index
    %59 = vector.load %arg11[%c0_38, %c24] : memref<128x128xf32, #tpu.memory_space<vmem>>, vector<128x8xf32>
    tpu.vector_store %arg11[%c0_38, %c24], %29 {strides = array<i32>} : memref<128x128xf32, #tpu.memory_space<vmem>>, vector<128x8xf32>,
    %c0_39 = arith.constant 0 : index
    %c32 = arith.constant 32 : index
    %60 = vector.load %arg11[%c0_39, %c32] : memref<128x128xf32, #tpu.memory_space<vmem>>, vector<128x1xf32>
    tpu.vector_store %arg11[%c0_39, %c32], %34 {strides = array<i32>} : memref<128x128xf32, #tpu.memory_space<vmem>>, vector<128x1xf32>,
    %c0_40 = arith.constant 0 : index
    %c33 = arith.constant 33 : index
    %61 = vector.load %arg11[%c0_40, %c33] : memref<128x128xf32, #tpu.memory_space<vmem>>, vector<128x1xf32>
    tpu.vector_store %arg11[%c0_40, %c33], %55 {strides = array<i32>} : memref<128x128xf32, #tpu.memory_space<vmem>>, vector<128x1xf32>,
    %cst_41 = arith.constant 0.000000e+00 : f32
    %62 = vector.broadcast %cst_41 : f32 to vector<128x94xf32>
    %c0_42 = arith.constant 0 : index
    %c34 = arith.constant 34 : index
    %63 = vector.load %arg11[%c0_42, %c34] : memref<128x128xf32, #tpu.memory_space<vmem>>, vector<128x94xf32>
    tpu.vector_store %arg11[%c0_42, %c34], %62 {strides = array<i32>} : memref<128x128xf32, #tpu.memory_space<vmem>>, vector<128x94xf32>,
    return
  }
  func.func @transform_0(%arg0: i32) -> (i32, i32) {
    %c0_i32 = arith.constant 0 : i32
    %c0_i32_0 = arith.constant 0 : i32
    return %arg0, %c0_i32 : i32, i32
  }
  func.func @transform_1(%arg0: i32) -> (i32, i32) {
    %c0_i32 = arith.constant 0 : i32
    %c0_i32_0 = arith.constant 0 : i32
    return %arg0, %c0_i32 : i32, i32
  }
  func.func @transform_2(%arg0: i32) -> (i32, i32) {
    %c0_i32 = arith.constant 0 : i32
    %c0_i32_0 = arith.constant 0 : i32
    return %arg0, %c0_i32 : i32, i32
  }
  func.func @transform_3(%arg0: i32) -> (i32, i32) {
    %c0_i32 = arith.constant 0 : i32
    %c0_i32_0 = arith.constant 0 : i32
    %c0_i32_1 = arith.constant 0 : i32
    return %c0_i32, %c0_i32_0 : i32, i32
  }
  func.func @transform_4(%arg0: i32) -> (i32, i32) {
    %c0_i32 = arith.constant 0 : i32
    %c0_i32_0 = arith.constant 0 : i32
    %c0_i32_1 = arith.constant 0 : i32
    return %c0_i32, %c0_i32_0 : i32, i32
  }
  func.func @transform_5(%arg0: i32) -> (i32, i32) {
    %c0_i32 = arith.constant 0 : i32
    %c0_i32_0 = arith.constant 0 : i32
    %c0_i32_1 = arith.constant 0 : i32
    return %c0_i32, %c0_i32_0 : i32, i32
  }
  func.func @transform_6(%arg0: i32) -> (i32, i32) {
    %c0_i32 = arith.constant 0 : i32
    %c0_i32_0 = arith.constant 0 : i32
    %c0_i32_1 = arith.constant 0 : i32
    return %c0_i32, %c0_i32_0 : i32, i32
  }
  func.func @transform_7(%arg0: i32) -> (i32, i32) {
    %c0_i32 = arith.constant 0 : i32
    %c0_i32_0 = arith.constant 0 : i32
    %c0_i32_1 = arith.constant 0 : i32
    return %c0_i32, %c0_i32_0 : i32, i32
  }
  func.func @transform_8(%arg0: i32) -> (i32, i32) {
    %c0_i32 = arith.constant 0 : i32
    %c0_i32_0 = arith.constant 0 : i32
    %c0_i32_1 = arith.constant 0 : i32
    return %c0_i32, %c0_i32_0 : i32, i32
  }
  func.func @transform_9(%arg0: i32) -> (i32, i32) {
    %c0_i32 = arith.constant 0 : i32
    %c0_i32_0 = arith.constant 0 : i32
    %c0_i32_1 = arith.constant 0 : i32
    return %c0_i32, %c0_i32_0 : i32, i32
  }
  func.func @transform_10(%arg0: i32) -> (i32, i32) {
    %c0_i32 = arith.constant 0 : i32
    %c0_i32_0 = arith.constant 0 : i32
    return %arg0, %c0_i32 : i32, i32
  }
}

</mosaic_0001>

<bundles_post_ra>
// kernel: tpu_custom_call.1
= control target key start
LH: loop header
LB: loop body
LE: loop exit
PB: predicated region body
PF: predicated region fallthrough
CT: control target
= control target key end

     0   :  { %15 = vsyncpa [#allocation3], 0  ;;  %s4180_s0 = inlined_call_operand.vmem [shape: f32[384,16], index: 0, kind: input, shape index: {}]   ;;  %s4181_s1 = inlined_call_operand.vmem [shape: f32[384,8], index: 1, kind: input, shape index: {}]   ;;  %s4182_s2 = inlined_call_operand.vmem [shape: f32[384,8], index: 2, kind: input, shape index: {}]   ;;  %s4183_s3 = inlined_call_operand.vmem [shape: f32[16,64], index: 3, kind: input, shape index: {}]   ;;  %s4184_s4 = inlined_call_operand.vmem [shape: f32[1,64], index: 4, kind: input, shape index: {}]   ;;  %s4185_s5 = inlined_call_operand.vmem [shape: f32[64,16], index: 5, kind: input, shape index: {}]   ;;  %s4186_s6 = inlined_call_operand.vmem [shape: f32[1,16], index: 6, kind: input, shape index: {}]   ;;  %s4187_s7 = inlined_call_operand.vmem [shape: f32[8,32], index: 7, kind: input, shape index: {}]   ;;  %s4188_s8 = inlined_call_operand.vmem [shape: f32[32,8], index: 8, kind: input, shape index: {}]   ;;  %s4189_s9 = inlined_call_operand.vmem [shape: f32[1,8], index: 9, kind: input, shape index: {}]   ;;  %s4190_s10 = inlined_call_operand.hbm [shape: f32[384,128], index: 10, kind: output, shape index: {}]  }
   0x1   :  { %17 = vsyncpa [#allocation3 + $0x1], 0  ;;  %s2985_s13 = smov 0   ;;  %s2987_s14 = smov 0  }
   0x2   :  { %s2989_s15 = smov 0   ;;  %s2991_s16 = smov 0  }
   0x3 LB: > { %s3006_s17 = sadd.s32 4294967295, %s2922_s16   ;;  %s2411_s18 = sadd.s32 4294967294, %s2922_s16   ;;  %s2922_s16 = sphi %s2991_s16, %s4201_s16   ;;  %s2918_s15 = sphi %s2989_s15, %s4200_s15   ;;  %s2914_s14 = sphi %s2987_s14, %s4199_s14   ;;  %s2910_s13 = sphi %s2985_s13, %s4198_s13  }
   0x4   : > { %s3010_s19 = sadd.s32 1, %s2922_s16   ;;  %s255_s20 = sadd.s32 1, %s2918_s15 }
   0x5   : > { %s252_s21 = ssub.s32 %s2922_s16, %s3010_s19  ;;  %p265_p0 = scmp.ne.s32.totalorder %s2918_s15, %s2914_s14 }
   0x6   : > { %p253_p1 = scmp.eq.s32.totalorder %s252_s21, 0  ;;  %p266_p2 = scmp.eq.s32.totalorder %s3006_s17, 2 }
   0x7   : > { %p271_p3 = scmp.ne.s32.totalorder %s2914_s14, %s2910_s13  ;;  %p272_p4 = scmp.eq.s32.totalorder %s2411_s18, 2 }
   0x8   : > { %s3021_s22 = scalar_select %p253_p1, %s2918_s15, %s255_s20  }
   0x9   : > { %p3023_p5 = por %p266_p2, %p265_p0  ;;  %p3027_p6 = por %p272_p4, %p271_p3 }
   0xa   : > { %p2414_p7 = scmp.ge.s32.totalorder %s2922_s16, 1  ;;  %p338_p8 = scmp.lt.s32.totalorder %s2922_s16, 4 }
   0xc   : > { %p339_p9 = pnand %p2414_p7, %p338_p8 }
   0xd   : > { %v421_v0 = vld [vmem:[%s4183_s3] sm:$0xff] (!%p339_p9)  ;;  %v422_v1 = vld [vmem:[%s4183_s3 + $0x8] sm:$0xff] (!%p339_p9)  ;;  %s2416_s29 = sshll.u32 (!%p339_p9), %s3006_s17, 4  ;;  %v642_v5 = vld [vmem:[%s4185_s5 + $0x10] sm:$0xff] (!%p339_p9)  ;;  %vm430_vm0 = vcmask (!%p339_p9), 130048   ;;  %vm655_vm1 = vcmask (!%p339_p9), 523264  }
   0xe   : > { %342 = sbr.rel (%p339_p9) target bundleno = 1582 (0x62e), region = 60  ;;  %v640_v2 = vld [vmem:[%s4185_s5] sm:$0xff] (!%p339_p9)  ;;  %v2716_v3 = vpack.c.bf16 (!%p339_p9), %v422_v1, %v421_v0  ;;  %p387_p10 = scmp.lt.s32.totalorder (!%p339_p9), %s2416_s29, 47  ;;  %v641_v4 = vld [vmem:[%s4185_s5 + $0x8] sm:$0xff] (!%p339_p9)  ;;  %v643_v6 = vld [vmem:[%s4185_s5 + $0x18] sm:$0xff] (!%p339_p9)  ;;  %vm1074_vm2 = vcmask (!%p339_p9), 64512  }
   0xf   : > { %v2720_v7 = vpack.c.bf16 (!%p339_p9), %v641_v4, %v640_v2  ;;  %v2724_v8 = vpack.c.bf16 (!%p339_p9), %v643_v6, %v642_v5  ;;  %v644_v9 = vld [vmem:[%s4185_s5 + $0x20] sm:$0xff] (!%p339_p9)  ;;  %v645_v10 = vld [vmem:[%s4185_s5 + $0x28] sm:$0xff] (!%p339_p9)  ;;  %v646_v16 = vld [vmem:[%s4185_s5 + $0x30] sm:$0xff] (!%p339_p9)  ;;  %s2925_s26 = smov (!%p339_p9), 120   ;;  %s4191_s12 = sand.u32 (!%p339_p9), 1, %s2914_s14   ;;  %vm1295_vm3 = vcmask (!%p339_p9), 261120  }
  0x10   : > { %2717 = vmatprep.subr.bf16.mxu0 (!%p339_p9), %v2716_v3  ;;  %v2728_v14 = vpack.c.bf16 (!%p339_p9), %v645_v10, %v644_v9  ;;  %v647_v17 = vld [vmem:[%s4185_s5 + $0x38] sm:$0xff] (!%p339_p9)  ;;  %v2422_v47 = vld [vmem:[%s4184_s4] ss:$0 sm:$0xff] (!%p339_p9)  ;;  %vm2081_vm4 = vcmask (!%p339_p9), 130112   ;;  %vm2162_vm5 = vcmask (!%p339_p9), 195712   ;;  %s2926_s20 = smov (!%p339_p9), 24  }
  0x11   : > { %2719 = vmatpush3.bf16.msra.mxu0 (!%p339_p9), %v2716_v3  ;;  %2744 = vmatprep.subr.bf16.mxu1 (!%p339_p9), %v2720_v7  ;;  %v2732_v19 = vpack.c.bf16 (!%p339_p9), %v647_v17, %v646_v16  ;;  %vm2243_vm6 = vcmask (!%p339_p9), 261312   ;;  %vm2260_vm7 = vcmask (!%p339_p9), 269568   ;;  %vm2277_vm8 = vcmask (!%p339_p9), 277768   ;;  %s2928_s25 = smov (!%p339_p9), [#allocation2]  }
  0x12   : > { %2721 = vmatprep.subr.bf16.mxu0 (!%p339_p9), %v2720_v7  ;;  %2748 = vmatpush3.bf16.msra.mxu1 (!%p339_p9), %v2720_v7  ;;  %vm2294_vm9 = vcmask (!%p339_p9), 1047824  }
  0x13   : > { %2745 = vmatprep.subr.bf16.mxu1 (!%p339_p9), %v2724_v8 }
  0x15   : > { %s4203_s29 = smov (!%p387_p10, %s2416_s29), 47 }
  0x16   : > { %s3052_s27 = sshll.u32 %s4203_s29, 3  ;;  %2749 = vmatpush3.bf16.msra.mxu1 %v2724_v8  ;;  %s4192_s29 = smov 8  }
  0x17   : > { %s3058_s11 = scalar_lea.vmem %s4180_s0, %s3052_s27  ;;  %2746 = vmatprep.subr.bf16.mxu1 %v2728_v14  ;;  %s3108_s18 = scalar_lea.vmem %s4182_s2, %s3052_s27 }
  0x18   : > { %v405_v11 = vld [vmem:[%s3058_s11] sm:$0xff]  ;;  %v406_v12 = vld [vmem:[%s3058_s11 + $0x8] sm:$0xff]  ;;  %v407_v13 = vld [vmem:[%s3058_s11 + $0x10] sm:$0xff]  ;;  %s3892_s28 = scalar_lea.vmem %s4181_s1, %s3052_s27  ;;  %s2510_s27 = sshll.u32 %s3006_s17, 11 }
  0x19   : > { %2594 = vmatprep.mubr.msk.f32.mxu0 %vm430_vm0, %v405_v11  ;;  %v408_v15 = vld [vmem:[%s3058_s11 + $0x18] sm:$0xff]  ;;  %v409_v18 = vld [vmem:[%s3058_s11 + $0x20] sm:$0xff]  ;;  %v410_v20 = vld [vmem:[%s3058_s11 + $0x28] sm:$0xff]  ;;  %s4197_s17 = sand.u32 1, %s2914_s14  }
  0x1a   : > { %2595 = vmatmul.mubr.msk.f32.vlgmr.msra.gmra.mrb[0].mxu0 %vm430_vm0, %v406_v12  ;;  %2750 = vmatpush3.bf16.msra.mxu1 %v2728_v14  ;;  %v411_v21 = vld [vmem:[%s3058_s11 + $0x30] sm:$0xff]  ;;  %v412_v22 = vld [vmem:[%s3058_s11 + $0x38] sm:$0xff]  ;;  %v413_v23 = vld [vmem:[%s3058_s11 + $0x40] sm:$0xff] }
  0x1b   : > { %2597 = vmatprep.mubr.msk.f32.mxu0 %vm430_vm0, %v407_v13  ;;  %2723 = vmatpush3.bf16.msra.mxu0 %v2720_v7  ;;  %v414_v24 = vld [vmem:[%s3058_s11 + $0x48] sm:$0xff]  ;;  %v415_v25 = vld [vmem:[%s3058_s11 + $0x50] sm:$0xff]  ;;  %v416_v26 = vld [vmem:[%s3058_s11 + $0x58] sm:$0xff] }
  0x1c   : > { %2725 = vmatprep.subr.bf16.mxu0 %v2724_v8  ;;  %2747 = vmatprep.subr.bf16.mxu1 %v2732_v19  ;;  %v417_v27 = vld [vmem:[%s3058_s11 + $0x60] sm:$0xff]  ;;  %v418_v28 = vld [vmem:[%s3058_s11 + $0x68] sm:$0xff]  ;;  %v419_v29 = vld [vmem:[%s3058_s11 + $0x70] sm:$0xff] }
  0x1d   : > { %v420_v30 = vld [vmem:[%s3058_s11 + $0x78] sm:$0xff]  ;;  %v897_v31 = vld [vmem:[%s3108_s18] sm:$0xff]  ;;  %v899_v32 = vld [vmem:[%s3108_s18 + $0x10] sm:$0xff] }
  0x1e   : > { %2598 = vmatmul.mubr.msk.f32.gmra.mrb[2].mxu0 %vm430_vm0, %v408_v15  ;;  %2751 = vmatpush3.bf16.msra.mxu1 %v2732_v19  ;;  %v898_v33 = vld [vmem:[%s3108_s18 + $0x8] sm:$0xff]  ;;  %v900_v34 = vld [vmem:[%s3108_s18 + $0x18] sm:$0xff]  ;;  %v901_v36 = vld [vmem:[%s3108_s18 + $0x20] sm:$0xff] }
  0x1f   : > { %2600 = vmatprep.mubr.msk.f32.mxu0 %vm430_vm0, %v409_v18  ;;  %2727 = vmatpush3.bf16.msra.mxu0 %v2724_v8  ;;  %v902_v35 = vld [vmem:[%s3108_s18 + $0x28] sm:$0xff]  ;;  %v904_v37 = vld [vmem:[%s3108_s18 + $0x38] sm:$0xff]  ;;  %v903_v38 = vld [vmem:[%s3108_s18 + $0x30] sm:$0xff] }
  0x20   : > { %2729 = vmatprep.subr.bf16.mxu0 %v2728_v14  ;;  %929 = vrot.lane.b32.xlu0 %v897_v31, %s4192_s29  ;;  %v906_v39 = vld [vmem:[%s3108_s18 + $0x48] sm:$0xff]  ;;  %v905_v40 = vld [vmem:[%s3108_s18 + $0x40] sm:$0xff]  ;;  %v908_v41 = vld [vmem:[%s3108_s18 + $0x58] sm:$0xff] }
  0x21   : > { %933 = vrot.lane.b32.xlu1 %v899_v32, %s4192_s29  ;;  %v907_v42 = vld [vmem:[%s3108_s18 + $0x50] sm:$0xff]  ;;  %v910_v43 = vld [vmem:[%s3108_s18 + $0x68] sm:$0xff]  ;;  %v909_v44 = vld [vmem:[%s3108_s18 + $0x60] sm:$0xff] }
  0x22   : > { %2601 = vmatmul.mubr.msk.f32.gmra.mrb[4].mxu0 %vm430_vm0, %v410_v20  ;;  %v912_v45 = vld [vmem:[%s3108_s18 + $0x78] sm:$0xff]  ;;  %v911_v46 = vld [vmem:[%s3108_s18 + $0x70] sm:$0xff]  ;;  %v3164_v32 = vld [vmem:[%s4186_s6] ss:$0 sm:$0xff]  ;;  %s2415_s18 = sshll.u32 %s4191_s12, 7  ;;  %s4120_s12 = scalar_lea.hbm %s4190_s10, %s2510_s27 }
  0x23   : > { %2603 = vmatprep.mubr.msk.f32.mxu0 %vm430_vm0, %v411_v21  ;;  %2731 = vmatpush3.bf16.msra.mxu0 %v2728_v14  ;;  %s3324_s11 = scalar_lea.vmem [#allocation2], %s2415_s18 }
  0x24   : > { %2733 = vmatprep.subr.bf16.mxu0 %v2732_v19  ;;  %931 = vrot.lane.b32.xlu0 %v898_v33, %s4192_s29  ;;  %s2325_s30 = sshll.u32 %s3324_s11, 4  ;;  %s4126_s30 = int_to_ptr.vmem [resolvable:$true] %s2325_s30 }
  0x25   : > { %935 = vrot.lane.b32.xlu1 %v900_v34, %s4192_s29  ;;  %s2860_s21 = scalar_lea.vmem %s4126_s30, 2048 }
  0x26   : > { %2604 = vmatmul.mubr.msk.f32.gmra.mrb[6].mxu0 %vm430_vm0, %v412_v22  ;;  %p2861_p11 = scmp.ne.s32.totalorder %s4126_s30, %s2860_s21 }
  0x27   : > { %2606 = vmatprep.mubr.msk.f32.mxu0 %vm430_vm0, %v413_v23  ;;  %2735 = vmatpush3.bf16.msra.mxu0 %v2732_v19 }
  0x28   : > { %937 = vrot.lane.b32.xlu0 %v901_v36, %s4192_s29  ;;  %p2862_p12 = pnand %p2861_p11, %p3023_p5 }
  0x29   : > { %939 = vrot.lane.b32.xlu1 %v902_v35, %s4192_s29 }
  0x2a   : > { %2607 = vmatmul.mubr.msk.f32.gmra.mrb[8].mxu0 %vm430_vm0, %v414_v24  ;;  %p2863_p13 = pneg %p2862_p12 }
  0x2b   : > { %2609 = vmatprep.mubr.msk.f32.mxu0 %vm430_vm0, %v415_v25 }
  0x2c   : > { %941 = vrot.lane.b32.xlu0 %v903_v38, %s4192_s29 }
  0x2d   : > { %943 = vrot.lane.b32.xlu1 %v904_v37, %s4192_s29 }
  0x2e   : > { %2610 = vmatmul.mubr.msk.f32.gmra.mrb[10].mxu0 %vm430_vm0, %v416_v26 }
  0x2f   : > { %2612 = vmatprep.mubr.msk.f32.mxu0 %vm430_vm0, %v417_v27 }
  0x30   : > { %945 = vrot.lane.b32.xlu0 %v905_v40, %s4192_s29 }
  0x31   : > { %947 = vrot.lane.b32.xlu1 %v906_v39, %s4192_s29 }
  0x32   : > { %2613 = vmatmul.mubr.msk.f32.gmra.mrb[12].mxu0 %vm430_vm0, %v418_v28 }
  0x33   : > { %2615 = vmatprep.mubr.msk.f32.mxu0 %vm430_vm0, %v419_v29 }
  0x34   : > { %949 = vrot.lane.b32.xlu0 %v907_v42, %s4192_s29 }
  0x35   : > { %951 = vrot.lane.b32.xlu1 %v908_v41, %s4192_s29 }
  0x36   : > { %2616 = vmatmul.mubr.msk.f32.gmra.mrb[14].mxu0 %vm430_vm0, %v420_v30 }
  0x38   : > { %953 = vrot.lane.b32.xlu0 %v909_v44, %s4192_s29 }
  0x39   : > { %955 = vrot.lane.b32.xlu1 %v910_v43, %s4192_s29 }
  0x3c   : > { %957 = vrot.lane.b32.xlu0 %v911_v46, %s4192_s29 }
  0x3d   : > { %959 = vrot.lane.b32.xlu1 %v912_v45, %s4192_s29  ;;  %s4196_s29 = smov 8  }
  0xed   : > { %v2596_v48 = vpop.f32.mrb[0].mxu0 }
  0xee   : > { %v551_v49 = vadd.f32 %v2596_v48, %v2422_v47  ;;  %v545_v50 = vpop.f32.mrb[1].mxu0 }
  0xef   : > { %v546_v51 = vadd.f32 %v2422_v47, %v545_v50 }
  0xf0   : > { %v625_v54 = vmax.f32 %v551_v49, 0.0 }
  0xf1   : > { %v624_v52 = vmax.f32 %v546_v51, 0.0  ;;  %v2599_v53 = vpop.f32.mrb[2].mxu0 }
  0xf2   : > { %v561_v55 = vadd.f32 %v2599_v53, %v2422_v47  ;;  %v555_v56 = vpop.f32.mrb[3].mxu0 }
  0xf3   : > { %v556_v57 = vadd.f32 %v2422_v47, %v555_v56  ;;  %2634 = vmatprep.mubr.msk.f32.mxu0 %vm655_vm1, %v624_v52 }
  0xf4   : > { %2635 = vmatmul.mubr.msk.f32.vlgmr.msra.gmra.mrb[16].mxu0 %vm655_vm1, %v625_v54  ;;  %v627_v60 = vmax.f32 %v561_v55, 0.0 }
  0xf5   : > { %v626_v58 = vmax.f32 %v556_v57, 0.0  ;;  %v2602_v59 = vpop.f32.mrb[4].mxu0 }
  0xf6   : > { %v571_v61 = vadd.f32 %v2602_v59, %v2422_v47  ;;  %v565_v62 = vpop.f32.mrb[5].mxu0 }
  0xf7   : > { %v566_v63 = vadd.f32 %v2422_v47, %v565_v62  ;;  %2637 = vmatprep.mubr.msk.f32.mxu1 %vm655_vm1, %v626_v58 }
  0xf8   : > { %2638 = vmatmul.mubr.msk.f32.vlgmr.msra.gmra.mrb[0].mxu1 %vm655_vm1, %v627_v60  ;;  %v629_v2 = vmax.f32 %v571_v61, 0.0 }
  0xf9   : > { %v628_v0 = vmax.f32 %v566_v63, 0.0  ;;  %v2605_v1 = vpop.f32.mrb[6].mxu0 }
  0xfa   : > { %v581_v3 = vadd.f32 %v2605_v1, %v2422_v47  ;;  %v575_v4 = vpop.f32.mrb[7].mxu0 }
  0xfb   : > { %v576_v5 = vadd.f32 %v2422_v47, %v575_v4  ;;  %2640 = vmatprep.mubr.msk.f32.mxu1 %vm655_vm1, %v628_v0 }
  0xfc   : > { %2641 = vmatmul.mubr.msk.f32.gmra.mrb[2].mxu1 %vm655_vm1, %v629_v2  ;;  %v631_v8 = vmax.f32 %v581_v3, 0.0 }
  0xfd   : > { %v630_v6 = vmax.f32 %v576_v5, 0.0  ;;  %v2608_v7 = vpop.f32.mrb[8].mxu0 }
  0xfe   : > { %v591_v9 = vadd.f32 %v2608_v7, %v2422_v47  ;;  %v585_v10 = vpop.f32.mrb[9].mxu0 }
  0xff   : > { %2643 = vmatprep.mubr.msk.f32.mxu1 %vm655_vm1, %v630_v6  ;;  %v586_v11 = vadd.f32 %v2422_v47, %v585_v10 }
 0x100   : > { %2644 = vmatmul.mubr.msk.f32.gmra.mrb[4].mxu1 %vm655_vm1, %v631_v8  ;;  %v633_v12 = vmax.f32 %v591_v9, 0.0 }
 0x101   : > { %v632_v13 = vmax.f32 %v586_v11, 0.0  ;;  %v2611_v14 = vpop.f32.mrb[10].mxu0 }
 0x102   : > { %v601_v15 = vadd.f32 %v2611_v14, %v2422_v47  ;;  %v595_v16 = vpop.f32.mrb[11].mxu0  ;;  %v930_v14 = vpop.permute.xlu0 %929 }
 0x103   : > { %v596_v17 = vadd.f32 %v2422_v47, %v595_v16  ;;  %2646 = vmatprep.mubr.msk.f32.mxu1 %vm655_vm1, %v632_v13 }
 0x104   : > { %v635_v18 = vmax.f32 %v601_v15, 0.0  ;;  %2647 = vmatmul.mubr.msk.f32.gmra.mrb[6].mxu1 %vm655_vm1, %v633_v12 }
 0x105   : > { %v634_v19 = vmax.f32 %v596_v17, 0.0  ;;  %v2614_v20 = vpop.f32.mrb[12].mxu0 }
 0x106   : > { %v611_v21 = vadd.f32 %v2614_v20, %v2422_v47  ;;  %v605_v22 = vpop.f32.mrb[13].mxu0 }
 0x107   : > { %v606_v23 = vadd.f32 %v2422_v47, %v605_v22  ;;  %2649 = vmatprep.mubr.msk.f32.mxu1 %vm655_vm1, %v634_v19 }
 0x108   : > { %v637_v24 = vmax.f32 %v611_v21, 0.0  ;;  %2650 = vmatmul.mubr.msk.f32.gmra.mrb[8].mxu1 %vm655_vm1, %v635_v18 }
 0x109   : > { %v636_v25 = vmax.f32 %v606_v23, 0.0  ;;  %v2617_v26 = vpop.f32.mrb[14].mxu0  ;;  %v932_v23 = vpop.permute.xlu0 %931 }
 0x10a   : > { %v621_v27 = vadd.f32 %v2617_v26, %v2422_v47  ;;  %v615_v28 = vpop.f32.mrb[15].mxu0  ;;  %v1073_v26 = vld [vmem:[%s4187_s7] sm:$0xff] }
 0x10b   : > { %v616_v29 = vadd.f32 %v2422_v47, %v615_v28  ;;  %2652 = vmatprep.mubr.msk.f32.mxu1 %vm655_vm1, %v636_v25  ;;  %2658 = vmatprep.subr.mxu0 %v1073_v26 }
 0x10c   : > { %v639_v30 = vmax.f32 %v621_v27, 0.0  ;;  %2653 = vmatmul.mubr.msk.f32.gmra.mrb[10].mxu1 %vm655_vm1, %v637_v24  ;;  %2659 = vmatpush3.msra.mxu0 %v1073_v26 }
 0x10d   : > { %v638_v31 = vmax.f32 %v616_v29, 0.0 }
 0x10f   : > { %2655 = vmatprep.mubr.msk.f32.mxu1 %vm655_vm1, %v638_v31 }
 0x110   : > { %2656 = vmatmul.mubr.msk.f32.gmra.mrb[12].mxu1 %vm655_vm1, %v639_v30 }
 0x1c7   : > { %v2636_v33 = vpop.f32.mrb[16].mxu0 }
 0x1c8   : > { %v3167_v34 = vadd.f32 %v2636_v33, %v3164_v32  ;;  %v770_v35 = vpop.f32.mrb[17].mxu0 }
 0x1c9   : > { %v3170_v36 = vadd.f32 %v3164_v32, %v770_v35 }
 0x1ca   : > { %v1778_v37 = vmul.f32 %v3167_v34, %v3167_v34  ;;  %v850_v56 = vmul.f32 0.5, %v3167_v34 }
 0x1cb   : > { %v2639_v38 = vpop.f32.mrb[0].mxu1  ;;  %v1777_v39 = vmul.f32 %v3170_v36, %v3170_v36  ;;  %v849_v2 = vmul.f32 0.5, %v3170_v36 }
 0x1cc   : > { %v3177_v40 = vadd.f32 %v2639_v38, %v3164_v32  ;;  %v780_v41 = vpop.f32.mrb[1].mxu1  ;;  %v1796_v42 = vsel %vm1074_vm2, %v1778_v37, 0.0  ;;  %v867_v1 = vmul.f32 1.442695, %v850_v56  ;;  %v934_v38 = vpop.permute.xlu1 %933 }
 0x1cd   : > { %v3181_v43 = vadd.f32 %v3164_v32, %v780_v41  ;;  %1797 = vadd.xlane.f32.xlu0 %v1796_v42  ;;  %v1793_v44 = vsel %vm1074_vm2, %v1777_v39, 0.0  ;;  %v865_v9 = vmul.f32 1.442695, %v849_v2 }
 0x1ce   : > { %1794 = vadd.xlane.f32.xlu1 %v1793_v44  ;;  %v1780_v45 = vmul.f32 %v3177_v40, %v3177_v40  ;;  %2796 = vpow2.f32 %v867_v1  ;;  %v852_v28 = vmul.f32 0.5, %v3177_v40 }
 0x1cf   : > { %v2642_v46 = vpop.f32.mrb[2].mxu1  ;;  %v1779_v47 = vmul.f32 %v3181_v43, %v3181_v43  ;;  %2798 = vpow2.f32 %v865_v9 }
 0x1d0   : > { %v3189_v48 = vadd.f32 %v2642_v46, %v3164_v32  ;;  %v790_v49 = vpop.f32.mrb[3].mxu1  ;;  %v1802_v50 = vsel %vm1074_vm2, %v1780_v45, 0.0  ;;  %v871_v31 = vmul.f32 1.442695, %v852_v28  ;;  %v936_v41 = vpop.permute.xlu1 %935 }
 0x1d1   : > { %v3193_v51 = vadd.f32 %v3164_v32, %v790_v49  ;;  %1803 = vadd.xlane.f32.xlu0 %v1802_v50  ;;  %v1799_v52 = vsel %vm1074_vm2, %v1779_v47, 0.0  ;;  %v938_v46 = vpop.permute.xlu0 %937 }
 0x1d2   : > { %1800 = vadd.xlane.f32.xlu1 %v1799_v52  ;;  %v1782_v53 = vmul.f32 %v3189_v48, %v3189_v48  ;;  %2800 = vpow2.f32 %v871_v31  ;;  %v854_v49 = vmul.f32 0.5, %v3189_v48 }
 0x1d3   : > { %v2645_v54 = vpop.f32.mrb[4].mxu1  ;;  %v1781_v55 = vmul.f32 %v3193_v51, %v3193_v51  ;;  %v853_v56 = vmul.f32 0.5, %v3193_v51 }
 0x1d4   : > { %v3202_v57 = vadd.f32 %v2645_v54, %v3164_v32  ;;  %v800_v58 = vpop.f32.mrb[5].mxu1  ;;  %v1808_v59 = vsel %vm1074_vm2, %v1782_v53, 0.0  ;;  %v940_v47 = vpop.permute.xlu1 %939 }
 0x1d5   : > { %v3206_v60 = vadd.f32 %v3164_v32, %v800_v58  ;;  %1809 = vadd.xlane.f32.xlu0 %v1808_v59  ;;  %v1805_v61 = vsel %vm1074_vm2, %v1781_v55, 0.0  ;;  %v3272_v53 = vpop.permute.xlu0 %941  ;;  %v875_v55 = vmul.f32 1.442695, %v854_v49 }
 0x1d6   : > { %1806 = vadd.xlane.f32.xlu1 %v1805_v61  ;;  %v1784_v62 = vmul.f32 %v3202_v57, %v3202_v57 }
 0x1d7   : > { %v1783_v63 = vmul.f32 %v3206_v60, %v3206_v60  ;;  %v2648_v0 = vpop.f32.mrb[6].mxu1 }
 0x1d8   : > { %v1814_v3 = vsel %vm1074_vm2, %v1784_v62, 0.0  ;;  %v3216_v4 = vadd.f32 %v2648_v0, %v3164_v32  ;;  %v810_v5 = vpop.f32.mrb[7].mxu1  ;;  %v3240_v22 = vpop.eup %2796 }
 0x1d9   : > { %1815 = vadd.xlane.f32.xlu0 %v1814_v3  ;;  %v1811_v6 = vsel %vm1074_vm2, %v1783_v63, 0.0  ;;  %v3220_v7 = vadd.f32 %v3164_v32, %v810_v5  ;;  %v978_v24 = vmul.f32 %v3240_v22, %v932_v23  ;;  %v3243_v25 = vpop.eup %2798  ;;  %v3274_v54 = vpop.permute.xlu1 %943  ;;  %v873_v63 = vmul.f32 1.442695, %v853_v56 }
 0x1da   : > { %1812 = vadd.xlane.f32.xlu1 %v1811_v6  ;;  %v977_v27 = vmul.f32 %v3243_v25, %v930_v14  ;;  %v1786_v29 = vmul.f32 %v3216_v4, %v3216_v4  ;;  %v3279_v61 = vpop.permute.xlu0 %945 }
 0x1db   : > { %v2651_v8 = vpop.f32.mrb[8].mxu1  ;;  %v1785_v30 = vmul.f32 %v3220_v7, %v3220_v7 }
 0x1dc   : > { %v3223_v10 = vadd.f32 %v2651_v8, %v3164_v32  ;;  %v820_v11 = vpop.f32.mrb[9].mxu1  ;;  %v1820_v33 = vsel %vm1074_vm2, %v1786_v29, 0.0  ;;  %v3259_v39 = vpop.eup %2800 }
 0x1dd   : > { %v3226_v12 = vadd.f32 %v3164_v32, %v820_v11  ;;  %v1817_v35 = vsel %vm1074_vm2, %v1785_v30, 0.0  ;;  %v980_v42 = vmul.f32 %v3259_v39, %v936_v41  ;;  %v3281_v62 = vpop.permute.xlu1 %947 }
 0x1de   : > { %v1788_v50 = vmul.f32 %v3223_v10, %v3223_v10  ;;  %v3283_v0 = vpop.permute.xlu0 %949 }
 0x1df   : > { %v2654_v13 = vpop.f32.mrb[10].mxu1  ;;  %v1787_v52 = vmul.f32 %v3226_v12, %v3226_v12  ;;  %v859_v56 = vmul.f32 0.5, %v3226_v12 }
 0x1e0   : > { %v3229_v15 = vadd.f32 %v2654_v13, %v3164_v32  ;;  %v830_v16 = vpop.f32.mrb[11].mxu1  ;;  %v1826_v58 = vsel %vm1074_vm2, %v1788_v50, 0.0  ;;  %v857_v50 = vmul.f32 0.5, %v3220_v7 }
 0x1e1   : > { %v3232_v17 = vadd.f32 %v3164_v32, %v830_v16  ;;  %v1823_v59 = vsel %vm1074_vm2, %v1787_v52, 0.0  ;;  %v3285_v1 = vpop.permute.xlu1 %951  ;;  %v3349_v52 = vmul.f32 %v3240_v22, %v3240_v22 }
 0x1e2   : > { %v3289_v3 = vpop.permute.xlu0 %953 }
 0x1e3   : > { %v2657_v18 = vpop.f32.mrb[12].mxu1 }
 0x1e4   : > { %v3235_v19 = vadd.f32 %v2657_v18, %v3164_v32  ;;  %v840_v20 = vpop.f32.mrb[13].mxu1 }
 0x1e5   : > { %v3238_v21 = vadd.f32 %v3164_v32, %v840_v20  ;;  %v851_v32 = vmul.f32 0.5, %v3181_v43  ;;  %v3291_v5 = vpop.permute.xlu1 %955 }
 0x1e6   : > { %v3297_v9 = vpop.permute.xlu0 %957 }
 0x1e7   : > { %v869_v37 = vmul.f32 1.442695, %v851_v32  ;;  %v856_v32 = vmul.f32 0.5, %v3202_v57 }
 0x1e9   : > { %2802 = vpow2.f32 %v869_v37  ;;  %v3300_v13 = vpop.permute.xlu1 %959  ;;  %v855_v37 = vmul.f32 0.5, %v3206_v60 }
 0x1ea   : > { %2804 = vpow2.f32 %v875_v55  ;;  %v881_v55 = vmul.f32 1.442695, %v857_v50 }
 0x1eb   : > { %1011 = vrot.lane.b32.xlu1 %v978_v24, %s2925_s26  ;;  %2806 = vpow2.f32 %v873_v63  ;;  %v860_v63 = vmul.f32 0.5, %v3223_v10 }
 0x1ef   : > { %1009 = vrot.lane.b32.xlu0 %v977_v27, %s2925_s26 }
 0x1f3   : > { %v3262_v44 = vpop.eup %2802 }
 0x1f4   : > { %v979_v45 = vmul.f32 %v3262_v44, %v934_v38  ;;  %v3287_v2 = vpop.eup %2804  ;;  %v879_v38 = vmul.f32 1.442695, %v856_v32  ;;  %v861_v32 = vmul.f32 0.5, %v3232_v17 }
 0x1f5   : > { %v982_v6 = vmul.f32 %v3287_v2, %v940_v47  ;;  %v3294_v8 = vpop.eup %2806  ;;  %v3343_v47 = vmul.f32 %v3243_v25, %v3243_v25 }
 0x1f6   : > { %v981_v11 = vmul.f32 %v3294_v8, %v938_v46  ;;  %v858_v46 = vmul.f32 0.5, %v3216_v4  ;;  %2808 = vpow2.f32 %v879_v38 }
 0x1f8   : > { %v883_v49 = vmul.f32 1.442695, %v858_v46 }
 0x20e   : > { %1821 = vadd.xlane.f32.xlu0 %v1820_v33  ;;  %v1790_v33 = vmul.f32 %v3229_v15, %v3229_v15 }
 0x20f   : > { %1818 = vadd.xlane.f32.xlu1 %v1817_v35  ;;  %v1789_v35 = vmul.f32 %v3232_v17, %v3232_v17 }
 0x210   : > { %v1832_v41 = vsel %vm1074_vm2, %v1790_v33, 0.0  ;;  %v3374_v33 = vmul.f32 %v3294_v8, %v3294_v8 }
 0x220   : > { %1015 = vrot.lane.b32.xlu1 %v980_v42, %s2925_s26  ;;  %v1829_v42 = vsel %vm1074_vm2, %v1789_v35, 0.0 }
 0x224   : > { %1013 = vrot.lane.b32.xlu0 %v979_v45, %s2925_s26  ;;  %v877_v45 = vmul.f32 1.442695, %v855_v37 }
 0x226   : > { %2810 = vpow2.f32 %v877_v45  ;;  %v3386_v45 = vmul.f32 %v3287_v2, %v3287_v2 }
 0x227   : > { %2812 = vlog2.f32 %v3343_v47 }
 0x228   : > { %2814 = vpow2.f32 %v883_v49 }
 0x229   : > { %2816 = vlog2.f32 %v3349_v52 }
 0x22a   : > { %2818 = vpow2.f32 %v881_v55 }
 0x243   : > { %1827 = vadd.xlane.f32.xlu0 %v1826_v58  ;;  %v3355_v58 = vmul.f32 %v3259_v39, %v3259_v39 }
 0x244   : > { %1824 = vadd.xlane.f32.xlu1 %v1823_v59  ;;  %v3357_v59 = vpop.eup %2808 }
 0x245   : > { %2820 = vlog2.f32 %v3355_v58 }
 0x255   : > { %1019 = vrot.lane.b32.xlu1 %v982_v6, %s2925_s26  ;;  %v885_v6 = vmul.f32 1.442695, %v859_v56 }
 0x257   : > { %2822 = vpow2.f32 %v885_v6 }
 0x259   : > { %1017 = vrot.lane.b32.xlu0 %v981_v11, %s2925_s26  ;;  %v3363_v11 = vmul.f32 %v3262_v44, %v3262_v44 }
 0x25a   : > { %v3303_v14 = vpop.xlane.xlu0 %1797 }
 0x25b   : > { %v3305_v16 = vpop.xlane.xlu1 %1794  ;;  %2824 = vlog2.f32 %v3363_v11 }
 0x25e   : > { %v3307_v18 = vpop.xlane.xlu0 %1803 }
 0x25f   : > { %v3309_v20 = vpop.xlane.xlu1 %1800 }
 0x262   : > { %v3311_v23 = vpop.xlane.xlu0 %1809 }
 0x263   : > { %v3313_v24 = vpop.xlane.xlu1 %1806 }
 0x266   : > { %v3316_v26 = vpop.xlane.xlu0 %1815 }
 0x267   : > { %v3318_v27 = vpop.xlane.xlu1 %1812 }
 0x26a   : > { %v1010_v28 = vpop.permute.xlu0 %1009 }
 0x26b   : > { %v1057_v29 = vadd.f32 %v1010_v28, %v3170_v36  ;;  %v1012_v30 = vpop.permute.xlu1 %1011  ;;  %v3365_v28 = vpop.eup %2810 }
 0x26c   : > { %v1058_v31 = vadd.f32 %v1012_v30, %v3167_v34  ;;  %v2813_v30 = vpop.eup %2812  ;;  %v983_v37 = vmul.f32 %v3365_v28, %v3272_v53  ;;  %v3397_v56 = vmul.f32 %v3365_v28, %v3365_v28 }
 0x26d   : > { %2001 = vst.msk [vmem:[%s3324_s11] sm:$0xff] %vm1074_vm2, %v1057_v29  ;;  %2660 = vmatprep.mubr.msk.f32.mxu0 %vm1074_vm2, %v1057_v29  ;;  %v984_v29 = vmul.f32 %v3357_v59, %v3274_v54  ;;  %v3376_v35 = vpop.eup %2814  ;;  %v1602_v38 = vmul.f32 0.6931472, %v2813_v30  ;;  %v864_v30 = vmul.f32 0.5, %v3235_v19 }
 0x26e   : > { %2002 = vst.msk [vmem:[%s3324_s11 + $0x8] sm:$0xff] %vm1074_vm2, %v1058_v31  ;;  %2661 = vmatmul.mubr.msk.f32.vlgmr.msra.gmra.mrb[18].mxu0 %vm1074_vm2, %v1058_v31  ;;  %v887_v31 = vmul.f32 1.442695, %v860_v63  ;;  %v2817_v54 = vpop.eup %2816  ;;  %v986_v53 = vmul.f32 %v3376_v35, %v3281_v62 }
 0x26f   : > { %v3388_v46 = vpop.eup %2818  ;;  %v1604_v49 = vmul.f32 0.6931472, %v2817_v54  ;;  %v895_v54 = vmul.f32 1.442695, %v864_v30 }
 0x270   : > { %2826 = vpow2.f32 %v887_v31  ;;  %v2821_v50 = vpop.eup %2820  ;;  %v985_v6 = vmul.f32 %v3388_v46, %v3279_v61  ;;  %v3409_v31 = vmul.f32 %v3357_v59, %v3357_v59 }
 0x271   : > { %2828 = vlog2.f32 %v3374_v33  ;;  %v3399_v63 = vpop.eup %2822  ;;  %v1608_v62 = vmul.f32 0.6931472, %v2821_v50 }
 0x272   : > { %v987_v61 = vmul.f32 %v3399_v63, %v3283_v0 }
 0x278   : > { %1833 = vadd.xlane.f32.xlu0 %v1832_v41  ;;  %v862_v41 = vmul.f32 0.5, %v3229_v15 }
 0x279   : > { %1830 = vadd.xlane.f32.xlu1 %v1829_v42  ;;  %v889_v42 = vmul.f32 1.442695, %v861_v32 }
 0x27a   : > { %v891_v55 = vmul.f32 1.442695, %v862_v41 }
 0x27b   : > { %2830 = vpow2.f32 %v889_v42 }
 0x27c   : > { %2832 = vlog2.f32 %v3386_v45 }
 0x27d   : > { %2834 = vpow2.f32 %v891_v55 }
 0x27e   : > { %2836 = vlog2.f32 %v3397_v56 }
 0x27f   : > { %2838 = vlog2.f32 %v3409_v31 }
 0x280   : > { %2840 = vpow2.f32 %v895_v54 }
 0x28a   : > { %1023 = vrot.lane.b32.xlu1 %v984_v29, %s2925_s26  ;;  %v2825_v29 = vpop.eup %2824 }
 0x28b   : > { %v3411_v32 = vpop.eup %2826 }
 0x28e   : > { %1649 = vrot.lane.b32.xlu1 %v1602_v38, %s2925_s26  ;;  %1021 = vrot.lane.b32.xlu0 %v983_v37, %s2925_s26  ;;  %v1606_v37 = vmul.f32 0.6931472, %v2825_v29  ;;  %v2829_v38 = vpop.eup %2828 }
 0x28f   : > { %v3420_v42 = vpop.eup %2830  ;;  %v1610_v0 = vmul.f32 0.6931472, %v2829_v38 }
 0x290   : > { %v2833_v50 = vpop.eup %2832 }
 0x292   : > { %1027 = vrot.lane.b32.xlu1 %v986_v53, %s2925_s26  ;;  %1651 = vrot.lane.b32.xlu0 %v1604_v49, %s2925_s26  ;;  %v988_v53 = vmul.f32 %v3411_v32, %v3285_v1  ;;  %v1612_v1 = vmul.f32 0.6931472, %v2833_v50 }
 0x296   : > { %1655 = vrot.lane.b32.xlu1 %v1608_v62, %s2925_s26  ;;  %1025 = vrot.lane.b32.xlu0 %v985_v6, %s2925_s26  ;;  %v3428_v6 = vpop.eup %2834  ;;  %v989_v62 = vmul.f32 %v3420_v42, %v3289_v3 }
 0x297   : > { %v990_v3 = vmul.f32 %v3428_v6, %v3291_v5  ;;  %v1284_v5 = vld [vmem:[%s4188_s8] sm:$0xff] }
 0x29a   : > { %1653 = vrot.lane.b32.xlu1 %v1606_v37, %s2925_s26  ;;  %1029 = vrot.lane.b32.xlu0 %v987_v61, %s2925_s26  ;;  %v2837_v61 = vpop.eup %2836 }
 0x29b   : > { %v3417_v41 = vpop.xlane.xlu0 %1821  ;;  %v1614_v38 = vmul.f32 0.6931472, %v2837_v61  ;;  %v2839_v54 = vpop.eup %2838 }
 0x29c   : > { %v3424_v49 = vpop.xlane.xlu1 %1818 }
 0x29e   : > { %1031 = vrot.lane.b32.xlu1 %v988_v53, %s2925_s26  ;;  %1657 = vrot.lane.b32.xlu0 %v1610_v0, %s2925_s26  ;;  %v1616_v53 = vmul.f32 0.6931472, %v2839_v54  ;;  %v3446_v0 = vpop.eup %2840 }
 0x29f   : > { %v1014_v55 = vpop.permute.xlu0 %1013  ;;  %v992_v50 = vmul.f32 %v3446_v0, %v3300_v13  ;;  %v1286_v13 = vld [vmem:[%s4188_s8 + $0x10] sm:$0xff] }
 0x2a0   : > { %v1059_v29 = vadd.f32 %v1014_v55, %v3181_v43  ;;  %v1016_v30 = vpop.permute.xlu1 %1015  ;;  %v1285_v55 = vld [vmem:[%s4188_s8 + $0x8] sm:$0xff] }
 0x2a1   : > { %v1060_v37 = vadd.f32 %v1016_v30, %v3177_v40  ;;  %v1287_v30 = vld [vmem:[%s4188_s8 + $0x18] sm:$0xff] }
 0x2a2   : > { %2003 = vst.msk [vmem:[%s3324_s11 + $0x10] sm:$0xff] %vm1074_vm2, %v1059_v29  ;;  %1659 = vrot.lane.b32.xlu1 %v1612_v1, %s2925_s26  ;;  %1033 = vrot.lane.b32.xlu0 %v989_v62, %s2925_s26  ;;  %v2736_v62 = vpack.c.bf16 %v1285_v55, %v1284_v5  ;;  %v2740_v61 = vpack.c.bf16 %v1287_v30, %v1286_v13 }
 0x2a3   : > { %2004 = vst.msk [vmem:[%s3324_s11 + $0x18] sm:$0xff] %vm1074_vm2, %v1060_v37  ;;  %2663 = vmatprep.mubr.msk.f32.mxu0 %vm1074_vm2, %v1059_v29  ;;  %v1792_v29 = vmul.f32 %v3235_v19, %v3235_v19 }
 0x2a4   : > { %2664 = vmatmul.mubr.msk.f32.gmra.mrb[20].mxu0 %vm1074_vm2, %v1060_v37  ;;  %2737 = vmatprep.subr.bf16.mxu1 %v2736_v62  ;;  %v1791_v37 = vmul.f32 %v3238_v21, %v3238_v21 }
 0x2a5   : > { %2739 = vmatpush3.bf16.msra.mxu1 %v2736_v62  ;;  %v1838_v1 = vsel %vm1074_vm2, %v1792_v29, 0.0  ;;  %v3492_v62 = vmul.f32 %v3388_v46, %v3388_v46 }
 0x2a6   : > { %1035 = vrot.lane.b32.xlu1 %v990_v3, %s2925_s26  ;;  %1661 = vrot.lane.b32.xlu0 %v1614_v38, %s2925_s26  ;;  %v1835_v54 = vsel %vm1074_vm2, %v1791_v37, 0.0 }
 0x2a7   : > { %2741 = vmatprep.subr.bf16.mxu1 %v2740_v61 }
 0x2a9   : > { %2743 = vmatpush3.bf16.msra.mxu1 %v2740_v61 }
 0x2aa   : > { %1663 = vrot.lane.b32.xlu1 %v1616_v53, %s2925_s26 }
 0x2ae   : > { %1039 = vrot.lane.b32.xlu1 %v992_v50, %s2925_s26 }
 0x2c5   : > { %1839 = vadd.xlane.f32.xlu0 %v1838_v1 }
 0x2d0   : > { %v3469_v3 = vpop.xlane.xlu0 %1827 }
 0x2d1   : > { %v3471_v38 = vpop.xlane.xlu1 %1824 }
 0x2d2   : > { %1836 = vadd.xlane.f32.xlu1 %v1835_v54 }
 0x2d4   : > { %v1018_v53 = vpop.permute.xlu0 %1017 }
 0x2d5   : > { %v1061_v50 = vadd.f32 %v1018_v53, %v3193_v51  ;;  %v1020_v5 = vpop.permute.xlu1 %1019 }
 0x2d6   : > { %v1062_v55 = vadd.f32 %v1020_v5, %v3189_v48 }
 0x2d7   : > { %2005 = vst.msk [vmem:[%s3324_s11 + $0x20] sm:$0xff] %vm1074_vm2, %v1061_v50  ;;  %2666 = vmatprep.mubr.msk.f32.mxu0 %vm1074_vm2, %v1061_v50 }
 0x2d8   : > { %2006 = vst.msk [vmem:[%s3324_s11 + $0x28] sm:$0xff] %vm1074_vm2, %v1062_v55  ;;  %2667 = vmatmul.mubr.msk.f32.gmra.mrb[22].mxu0 %vm1074_vm2, %v1062_v55 }
 0x2db   : > { %1875 = vrot.lane.b32.xlu0 %v3349_v52, %s2925_s26  ;;  %v3500_v52 = vmul.f32 %v3399_v63, %v3399_v63 }
 0x2df   : > { %1881 = vrot.lane.b32.xlu0 %v3374_v33, %s2925_s26 }
 0x2e3   : > { %1873 = vrot.lane.b32.xlu1 %v3343_v47, %s2925_s26  ;;  %1885 = vrot.lane.b32.xlu0 %v3397_v56, %s2925_s26  ;;  %v3508_v47 = vmul.f32 %v3420_v42, %v3420_v42 }
 0x2e7   : > { %1877 = vrot.lane.b32.xlu1 %v3363_v11, %s2925_s26  ;;  %1889 = vrot.lane.b32.xlu0 %v3492_v62, %s2925_s26  ;;  %v3521_v11 = vmul.f32 %v3376_v35, %v3376_v35 }
 0x2eb   : > { %1879 = vrot.lane.b32.xlu1 %v3355_v58, %s2925_s26  ;;  %1893 = vrot.lane.b32.xlu0 %v3500_v52, %s2925_s26  ;;  %v863_v58 = vmul.f32 0.5, %v3238_v21 }
 0x2ed   : > { %v893_v33 = vmul.f32 1.442695, %v863_v58 }
 0x2ef   : > { %1883 = vrot.lane.b32.xlu1 %v3386_v45, %s2925_s26  ;;  %1897 = vrot.lane.b32.xlu0 %v3508_v47, %s2925_s26  ;;  %v3529_v45 = vmul.f32 %v3411_v32, %v3411_v32  ;;  %2842 = vpow2.f32 %v893_v33 }
 0x2f0   : > { %2844 = vlog2.f32 %v3492_v62 }
 0x2f1   : > { %2846 = vlog2.f32 %v3500_v52 }
 0x2f2   : > { %2848 = vlog2.f32 %v3508_v47 }
 0x2f3   : > { %1887 = vrot.lane.b32.xlu1 %v3409_v31, %s2925_s26  ;;  %2035 = vrot.lane.b32.xlu0 %v3167_v34, %s4196_s29  ;;  %v3537_v34 = vmul.f32 %v3428_v6, %v3428_v6 }
 0x2f7   : > { %1891 = vrot.lane.b32.xlu1 %v3521_v11, %s2925_s26  ;;  %2041 = vrot.lane.b32.xlu0 %v3193_v51, %s4196_s29 }
 0x2f9   : > { %v3549_v56 = vpop.eup %2842 }
 0x2fa   : > { %v991_v29 = vmul.f32 %v3549_v56, %v3297_v9 }
 0x2fb   : > { %1895 = vrot.lane.b32.xlu1 %v3529_v45, %s2925_s26  ;;  %2045 = vrot.lane.b32.xlu0 %v3206_v60, %s4196_s29 }
 0x2ff   : > { %1899 = vrot.lane.b32.xlu1 %v3537_v34, %s2925_s26  ;;  %2049 = vrot.lane.b32.xlu0 %v3220_v7, %s4196_s29 }
 0x303   : > { %2033 = vrot.lane.b32.xlu1 %v3170_v36, %s4196_s29  ;;  %2053 = vrot.lane.b32.xlu0 %v3226_v12, %s4196_s29 }
 0x305   : > { %v3547_v51 = vpop.xlane.xlu0 %1833 }
 0x306   : > { %v3551_v31 = vpop.xlane.xlu1 %1830 }
 0x307   : > { %2037 = vrot.lane.b32.xlu1 %v3181_v43, %s4196_s29  ;;  %2057 = vrot.lane.b32.xlu0 %v3232_v17, %s4196_s29 }
 0x309   : > { %v1022_v36 = vpop.permute.xlu0 %1021 }
 0x30a   : > { %v1063_v13 = vadd.f32 %v1022_v36, %v3206_v60  ;;  %v1024_v30 = vpop.permute.xlu1 %1023 }
 0x30b   : > { %v1064_v1 = vadd.f32 %v1024_v30, %v3202_v57  ;;  %2039 = vrot.lane.b32.xlu1 %v3177_v40, %s4196_s29  ;;  %1037 = vrot.lane.b32.xlu0 %v991_v29, %s2925_s26 }
 0x30c   : > { %2007 = vst.msk [vmem:[%s3324_s11 + $0x30] sm:$0xff] %vm1074_vm2, %v1063_v13  ;;  %2669 = vmatprep.mubr.msk.f32.mxu0 %vm1074_vm2, %v1063_v13 }
 0x30d   : > { %2008 = vst.msk [vmem:[%s3324_s11 + $0x38] sm:$0xff] %vm1074_vm2, %v1064_v1  ;;  %2670 = vmatmul.mubr.msk.f32.gmra.mrb[24].mxu0 %vm1074_vm2, %v1064_v1  ;;  %v3570_v43 = vpop.permute.xlu0 %1651 }
 0x30e   : > { %v3572_v60 = vpop.permute.xlu1 %1649 }
 0x30f   : > { %2043 = vrot.lane.b32.xlu1 %v3189_v48, %s4196_s29  ;;  %2061 = vrot.lane.b32.xlu0 %v3238_v21, %s4196_s29 }
 0x311   : > { %v1026_v40 = vpop.permute.xlu0 %1025 }
 0x312   : > { %v1065_v9 = vadd.f32 %v1026_v40, %v3220_v7  ;;  %v1028_v61 = vpop.permute.xlu1 %1027 }
 0x313   : > { %v1066_v37 = vadd.f32 %v1028_v61, %v3216_v4  ;;  %2047 = vrot.lane.b32.xlu1 %v3202_v57, %s4196_s29  ;;  %2114 = vrot.lane.b32.xlu0 %v3243_v25, %s4196_s29 }
 0x314   : > { %2009 = vst.msk [vmem:[%s3324_s11 + $0x40] sm:$0xff] %vm1074_vm2, %v1065_v9  ;;  %2672 = vmatprep.mubr.msk.f32.mxu0 %vm1074_vm2, %v1065_v9 }
 0x315   : > { %2010 = vst.msk [vmem:[%s3324_s11 + $0x48] sm:$0xff] %vm1074_vm2, %v1066_v37  ;;  %2673 = vmatmul.mubr.msk.f32.gmra.mrb[26].mxu0 %vm1074_vm2, %v1066_v37  ;;  %v1030_v48 = vpop.permute.xlu0 %1029 }
 0x316   : > { %v1067_v7 = vadd.f32 %v1030_v48, %v3226_v12  ;;  %v3591_v54 = vpop.permute.xlu1 %1655 }
 0x317   : > { %2051 = vrot.lane.b32.xlu1 %v3216_v4, %s4196_s29  ;;  %2118 = vrot.lane.b32.xlu0 %v3262_v44, %s4196_s29 }
 0x318   : > { %2011 = vst.msk [vmem:[%s3324_s11 + $0x50] sm:$0xff] %vm1074_vm2, %v1067_v7  ;;  %2675 = vmatprep.mubr.msk.f32.mxu0 %vm1074_vm2, %v1067_v7 }
 0x319   : > { %v3600_v57 = vpop.permute.xlu0 %1657 }
 0x31a   : > { %v3602_v25 = vpop.permute.xlu1 %1653 }
 0x31b   : > { %2055 = vrot.lane.b32.xlu1 %v3223_v10, %s4196_s29  ;;  %2122 = vrot.lane.b32.xlu0 %v3294_v8, %s4196_s29  ;;  %v1600_v8 = vmul.f32 %v3446_v0, %v3446_v0 }
 0x31d   : > { %v1034_v12 = vpop.permute.xlu0 %1033 }
 0x31e   : > { %v1069_v4 = vadd.f32 %v1034_v12, %v3232_v17  ;;  %v1032_v53 = vpop.permute.xlu1 %1031 }
 0x31f   : > { %v1068_v44 = vadd.f32 %v1032_v53, %v3223_v10  ;;  %2059 = vrot.lane.b32.xlu1 %v3229_v15, %s4196_s29  ;;  %2126 = vrot.lane.b32.xlu0 %v3365_v28, %s4196_s29 }
 0x320   : > { %2013 = vst.msk [vmem:[%s3324_s11 + $0x60] sm:$0xff] %vm1074_vm2, %v1069_v4 }
 0x321   : > { %2012 = vst.msk [vmem:[%s3324_s11 + $0x58] sm:$0xff] %vm1074_vm2, %v1068_v44  ;;  %2676 = vmatmul.mubr.msk.f32.gmra.mrb[28].mxu0 %vm1074_vm2, %v1068_v44 }
 0x322   : > { %v3621_v17 = vpop.permute.xlu1 %1659  ;;  %2678 = vmatprep.mubr.msk.f32.mxu0 %vm1074_vm2, %v1069_v4 }
 0x323   : > { %1903 = vrot.lane.b32.xlu1 %v1600_v8, %s2925_s26  ;;  %2130 = vrot.lane.b32.xlu0 %v3388_v46, %s4196_s29 }
 0x326   : > { %v1036_v10 = vpop.permute.xlu1 %1035 }
 0x327   : > { %v1070_v28 = vadd.f32 %v1036_v10, %v3229_v15  ;;  %2063 = vrot.lane.b32.xlu1 %v3235_v19, %s4196_s29  ;;  %2134 = vrot.lane.b32.xlu0 %v3399_v63, %s4196_s29  ;;  %v2845_v63 = vpop.eup %2844 }
 0x329   : > { %2014 = vst.msk [vmem:[%s3324_s11 + $0x68] sm:$0xff] %vm1074_vm2, %v1070_v28  ;;  %2679 = vmatmul.mubr.msk.f32.gmra.mrb[30].mxu0 %vm1074_vm2, %v1070_v28 }
 0x32a   : > { %v3636_v50 = vpop.permute.xlu1 %1663 }
 0x32b   : > { %2116 = vrot.lane.b32.xlu1 %v3240_v22, %s4196_s29  ;;  %2138 = vrot.lane.b32.xlu0 %v3420_v42, %s4196_s29  ;;  %v1599_v22 = vmul.f32 %v3549_v56, %v3549_v56 }
 0x32d   : > { %2850 = vlog2.f32 %v1599_v22 }
 0x32e   : > { %v1040_v15 = vpop.permute.xlu1 %1039  ;;  %2852 = vlog2.f32 %v3521_v11 }
 0x32f   : > { %v3644_v46 = vadd.f32 %v1040_v15, %v3235_v19  ;;  %2120 = vrot.lane.b32.xlu1 %v3259_v39, %s4196_s29  ;;  %2142 = vrot.lane.b32.xlu0 %v3549_v56, %s4196_s29  ;;  %v1618_v19 = vmul.f32 0.6931472, %v2845_v63  ;;  %v2847_v39 = vpop.eup %2846  ;;  %2854 = vlog2.f32 %v3529_v45  ;;  %v3679_v45 = vpop.permute.xlu0 %1661 }
 0x330   : > { %v1622_v42 = vmul.f32 0.6931472, %v2847_v39  ;;  %v2849_v5 = vpop.eup %2848  ;;  %2856 = vlog2.f32 %v3537_v34 }
 0x331   : > { %2016 = vst.msk [vmem:[%s3324_s11 + $0x78] sm:$0xff] %vm1074_vm2, %v3644_v46  ;;  %2858 = vlog2.f32 %v1600_v8 }
 0x333   : > { %2124 = vrot.lane.b32.xlu1 %v3287_v2, %s4196_s29  ;;  %1901 = vrot.lane.b32.xlu0 %v1599_v22, %s2925_s26  ;;  %v1626_v2 = vmul.f32 0.6931472, %v2849_v5 }
 0x337   : > { %2128 = vrot.lane.b32.xlu1 %v3357_v59, %s4196_s29  ;;  %1665 = vrot.lane.b32.xlu0 %v1618_v19, %s2925_s26  ;;  %v2851_v55 = vpop.eup %2850 }
 0x338   : > { %v1630_v62 = vmul.f32 0.6931472, %v2851_v55 }
 0x33b   : > { %2132 = vrot.lane.b32.xlu1 %v3376_v35, %s4196_s29  ;;  %1669 = vrot.lane.b32.xlu0 %v1622_v42, %s2925_s26 }
 0x33f   : > { %2136 = vrot.lane.b32.xlu1 %v3411_v32, %s4196_s29  ;;  %1673 = vrot.lane.b32.xlu0 %v1626_v2, %s2925_s26  ;;  %v2853_v32 = vpop.eup %2852 }
 0x340   : > { %v1620_v58 = vmul.f32 0.6931472, %v2853_v32  ;;  %v2855_v11 = vpop.eup %2854 }
 0x341   : > { %v2662_v59 = vpop.f32.mrb[18].mxu0  ;;  %v1624_v33 = vmul.f32 0.6931472, %v2855_v11 }
 0x342   : > { %v1189_v52 = vpop.f32.mrb[19].mxu0  ;;  %v1269_v35 = vmax.f32 %v2662_v59, 0.0 }
 0x343   : > { %v1268_v47 = vmax.f32 %v1189_v52, 0.0  ;;  %2140 = vrot.lane.b32.xlu1 %v3428_v6, %s4196_s29  ;;  %1677 = vrot.lane.b32.xlu0 %v1630_v62, %s2925_s26  ;;  %v2857_v6 = vpop.eup %2856  ;;  %v1697_v52 = vsel %vm1074_vm2, %v3572_v60, 0.0 }
 0x344   : > { %v1628_v34 = vmul.f32 0.6931472, %v2857_v6  ;;  %v2859_v56 = vpop.eup %2858  ;;  %v1706_v6 = vsel %vm1074_vm2, %v3591_v54, 0.0 }
 0x345   : > { %2692 = vmatprep.mubr.msk.f32.mxu1 %vm1295_vm3, %v1268_v47  ;;  %v1632_v36 = vmul.f32 0.6931472, %v2859_v56 }
 0x346   : > { %2693 = vmatmul.mubr.msk.f32.vlgmr.msra.gmra.mrb[14].mxu1 %vm1295_vm3, %v1269_v35 }
 0x347   : > { %2144 = vrot.lane.b32.xlu1 %v3446_v0, %s4196_s29 }
 0x34b   : > { %1667 = vrot.lane.b32.xlu1 %v1620_v58, %s2925_s26 }
 0x34f   : > { %1671 = vrot.lane.b32.xlu1 %v1624_v33, %s2925_s26  ;;  %v1700_v33 = vsel %vm1074_vm2, %v3570_v43, 0.0  ;;  %v1703_v43 = vsel %vm1074_vm2, %v3602_v25, 0.0 }
 0x352   : > { %v3682_v29 = vpop.xlane.xlu0 %1839 }
 0x353   : > { %1675 = vrot.lane.b32.xlu1 %v1628_v34, %s2925_s26 }
 0x356   : > { %v1876_v13 = vpop.permute.xlu0 %1875 }
 0x357   : > { %1679 = vrot.lane.b32.xlu1 %v1632_v36, %s2925_s26  ;;  %v1924_v59 = vsel %vm1074_vm2, %v1876_v13, 0.0 }
 0x35a   : > { %v1882_v0 = vpop.permute.xlu0 %1881 }
 0x35b   : > { %v1933_v35 = vsel %vm1074_vm2, %v1882_v0, 0.0 }
 0x35e   : > { %v1886_v30 = vpop.permute.xlu0 %1885 }
 0x35f   : > { %v3686_v1 = vpop.xlane.xlu1 %1836  ;;  %v1939_v56 = vsel %vm1074_vm2, %v1886_v30, 0.0 }
 0x362   : > { %v3688_v40 = vpop.permute.xlu0 %1889 }
 0x363   : > { %v1874_v9 = vpop.permute.xlu1 %1873 }
 0x364   : > { %v1921_v61 = vsel %vm1074_vm2, %v1874_v9, 0.0  ;;  %v1712_v9 = vsel %vm1074_vm2, %v3621_v17, 0.0 }
 0x365   : > { %1922 = vadd.xlane.f32.xlu0 %v1921_v61 }
 0x366   : > { %v3691_v37 = vpop.permute.xlu0 %1893 }
 0x367   : > { %v1878_v48 = vpop.permute.xlu1 %1877 }
 0x368   : > { %v1927_v8 = vsel %vm1074_vm2, %v1878_v48, 0.0  ;;  %v1709_v48 = vsel %vm1074_vm2, %v3600_v57, 0.0 }
 0x36a   : > { %v3693_v7 = vpop.permute.xlu0 %1897 }
 0x36b   : > { %v1880_v12 = vpop.permute.xlu1 %1879  ;;  %v1957_v17 = vsel %vm1074_vm2, %v3693_v7, 0.0 }
 0x36c   : > { %v1930_v4 = vsel %vm1074_vm2, %v1880_v12, 0.0 }
 0x36d   : > { %1931 = vadd.xlane.f32.xlu0 %v1930_v4 }
 0x36e   : > { %v2036_v53 = vpop.permute.xlu0 %2035 }
 0x36f   : > { %2083 = vst.msk [vmem:[%s3324_s11 + $0x8] sm:$0xff] %vm2081_vm4, %v2036_v53  ;;  %v1884_v44 = vpop.permute.xlu1 %1883  ;;  %v1718_v53 = vsel %vm1074_vm2, %v3636_v50, 0.0 }
 0x370   : > { %v1936_v15 = vsel %vm1074_vm2, %v1884_v44, 0.0 }
 0x371   : > { %1928 = vadd.xlane.f32.xlu0 %v1927_v8  ;;  %v1715_v8 = vsel %vm1074_vm2, %v3679_v45, 0.0 }
 0x372   : > { %v2042_v10 = vpop.permute.xlu0 %2041 }
 0x373   : > { %2086 = vst.msk [vmem:[%s3324_s11 + $0x20] sm:$0xff] %vm2081_vm4, %v2042_v10  ;;  %v1888_v28 = vpop.permute.xlu1 %1887 }
 0x374   : > { %v1942_v42 = vsel %vm1074_vm2, %v1888_v28, 0.0 }
 0x375   : > { %1937 = vadd.xlane.f32.xlu0 %v1936_v15 }
 0x376   : > { %v2046_v22 = vpop.permute.xlu0 %2045 }
 0x377   : > { %v2665_v63 = vpop.f32.mrb[20].mxu0  ;;  %2088 = vst.msk [vmem:[%s3324_s11 + $0x30] sm:$0xff] %vm2081_vm4, %v2046_v22  ;;  %v1892_v19 = vpop.permute.xlu1 %1891 }
 0x378   : > { %v1199_v39 = vpop.f32.mrb[21].mxu0  ;;  %v1271_v2 = vmax.f32 %v2665_v63, 0.0  ;;  %v1948_v58 = vsel %vm1074_vm2, %v1892_v19, 0.0 }
 0x379   : > { %v1270_v5 = vmax.f32 %v1199_v39, 0.0  ;;  %1943 = vadd.xlane.f32.xlu0 %v1942_v42 }
 0x37a   : > { %v2050_v55 = vpop.permute.xlu0 %2049 }
 0x37b   : > { %2695 = vmatprep.mubr.msk.f32.mxu1 %vm1295_vm3, %v1270_v5  ;;  %2090 = vst.msk [vmem:[%s3324_s11 + $0x40] sm:$0xff] %vm2081_vm4, %v2050_v55  ;;  %v1896_v62 = vpop.permute.xlu1 %1895  ;;  %1925 = vadd.xlane.f32.xlu1 %v1924_v59 }
 0x37c   : > { %2696 = vmatmul.mubr.msk.f32.gmra.mrb[16].mxu1 %vm1295_vm3, %v1271_v2  ;;  %v1954_v25 = vsel %vm1074_vm2, %v1896_v62, 0.0 }
 0x37d   : > { %1698 = vadd.xlane.f32.xlu0 %v1697_v52 }
 0x37e   : > { %v2054_v47 = vpop.permute.xlu0 %2053 }
 0x37f   : > { %2092 = vst.msk [vmem:[%s3324_s11 + $0x50] sm:$0xff] %vm2081_vm4, %v2054_v47  ;;  %v1900_v32 = vpop.permute.xlu1 %1899  ;;  %1934 = vadd.xlane.f32.xlu1 %v1933_v35 }
 0x380   : > { %v1960_v12 = vsel %vm1074_vm2, %v1900_v32, 0.0 }
 0x381   : > { %1949 = vadd.xlane.f32.xlu0 %v1948_v58 }
 0x382   : > { %v2058_v11 = vpop.permute.xlu0 %2057 }
 0x383   : > { %2094 = vst.msk [vmem:[%s3324_s11 + $0x60] sm:$0xff] %vm2081_vm4, %v2058_v11  ;;  %v2034_v60 = vpop.permute.xlu1 %2033  ;;  %1701 = vadd.xlane.f32.xlu1 %v1700_v33 }
 0x384   : > { %2082 = vst.msk [vmem:[%s3324_s11] sm:$0xff] %vm2081_vm4, %v2034_v60 }
 0x385   : > { %1707 = vadd.xlane.f32.xlu0 %v1706_v6 }
 0x386   : > { %v1038_v34 = vpop.permute.xlu0 %1037 }
 0x387   : > { %v1071_v36 = vadd.f32 %v1038_v34, %v3238_v21  ;;  %v2038_v13 = vpop.permute.xlu1 %2037  ;;  %1940 = vadd.xlane.f32.xlu1 %v1939_v56  ;;  %v1945_v21 = vsel %vm1074_vm2, %v3688_v40, 0.0 }
 0x388   : > { %2084 = vst.msk [vmem:[%s3324_s11 + $0x10] sm:$0xff] %vm2081_vm4, %v2038_v13 }
 0x389   : > { %2015 = vst.msk [vmem:[%s3324_s11 + $0x70] sm:$0xff] %vm1074_vm2, %v1071_v36  ;;  %1704 = vadd.xlane.f32.xlu0 %v1703_v43  ;;  %2681 = vmatprep.mubr.msk.f32.mxu0 %vm1074_vm2, %v1071_v36 }
 0x38a   : > { %2682 = vmatmul.mubr.msk.f32.gmra.mrb[32].mxu0 %vm1074_vm2, %v3644_v46  ;;  %v2062_v54 = vpop.permute.xlu0 %2061  ;;  %v1951_v46 = vsel %vm1074_vm2, %v3691_v37, 0.0 }
 0x38b   : > { %2096 = vst.msk [vmem:[%s3324_s11 + $0x70] sm:$0xff] %vm2081_vm4, %v2062_v54  ;;  %v2040_v0 = vpop.permute.xlu1 %2039  ;;  %1946 = vadd.xlane.f32.xlu1 %v1945_v21 }
 0x38c   : > { %2085 = vst.msk [vmem:[%s3324_s11 + $0x18] sm:$0xff] %vm2081_vm4, %v2040_v0 }
 0x38d   : > { %1955 = vadd.xlane.f32.xlu0 %v1954_v25 }
 0x38e   : > { %v2115_v30 = vpop.permute.xlu0 %2114 }
 0x38f   : > { %2163 = vst.msk [vmem:[%s3324_s11] sm:$0xff] %vm2162_vm5, %v2115_v30  ;;  %v2044_v40 = vpop.permute.xlu1 %2043  ;;  %1952 = vadd.xlane.f32.xlu1 %v1951_v46 }
 0x390   : > { %2087 = vst.msk [vmem:[%s3324_s11 + $0x28] sm:$0xff] %vm2081_vm4, %v2044_v40 }
 0x391   : > { %1713 = vadd.xlane.f32.xlu0 %v1712_v9 }
 0x392   : > { %v2119_v61 = vpop.permute.xlu0 %2118 }
 0x393   : > { %2165 = vst.msk [vmem:[%s3324_s11 + $0x10] sm:$0xff] %vm2162_vm5, %v2119_v61  ;;  %v2048_v37 = vpop.permute.xlu1 %2047  ;;  %1710 = vadd.xlane.f32.xlu1 %v1709_v48 }
 0x394   : > { %2089 = vst.msk [vmem:[%s3324_s11 + $0x38] sm:$0xff] %vm2081_vm4, %v2048_v37 }
 0x395   : > { %1961 = vadd.xlane.f32.xlu0 %v1960_v12 }
 0x396   : > { %v2123_v4 = vpop.permute.xlu0 %2122 }
 0x397   : > { %2167 = vst.msk [vmem:[%s3324_s11 + $0x20] sm:$0xff] %vm2162_vm5, %v2123_v4  ;;  %v2052_v57 = vpop.permute.xlu1 %2051  ;;  %1958 = vadd.xlane.f32.xlu1 %v1957_v17 }
 0x398   : > { %2091 = vst.msk [vmem:[%s3324_s11 + $0x48] sm:$0xff] %vm2081_vm4, %v2052_v57 }
 0x399   : > { %1719 = vadd.xlane.f32.xlu0 %v1718_v53 }
 0x39a   : > { %v2127_v44 = vpop.permute.xlu0 %2126 }
 0x39b   : > { %2169 = vst.msk [vmem:[%s3324_s11 + $0x30] sm:$0xff] %vm2162_vm5, %v2127_v44  ;;  %v2056_v7 = vpop.permute.xlu1 %2055  ;;  %1716 = vadd.xlane.f32.xlu1 %v1715_v8 }
 0x39c   : > { %2093 = vst.msk [vmem:[%s3324_s11 + $0x58] sm:$0xff] %vm2081_vm4, %v2056_v7 }
 0x39e   : > { %v2131_v10 = vpop.permute.xlu0 %2130 }
 0x39f   : > { %2171 = vst.msk [vmem:[%s3324_s11 + $0x40] sm:$0xff] %vm2162_vm5, %v2131_v10  ;;  %v2060_v28 = vpop.permute.xlu1 %2059 }
 0x3a0   : > { %2095 = vst.msk [vmem:[%s3324_s11 + $0x68] sm:$0xff] %vm2081_vm4, %v2060_v28 }
 0x3a2   : > { %v2135_v50 = vpop.permute.xlu0 %2134 }
 0x3a3   : > { %2173 = vst.msk [vmem:[%s3324_s11 + $0x50] sm:$0xff] %vm2162_vm5, %v2135_v50  ;;  %v1904_v15 = vpop.permute.xlu1 %1903 }
 0x3a4   : > { %v1966_v45 = vsel %vm1074_vm2, %v1904_v15, 0.0 }
 0x3a5   : > { %1967 = vadd.xlane.f32.xlu0 %v1966_v45 }
 0x3a6   : > { %v2139_v22 = vpop.permute.xlu0 %2138 }
 0x3a7   : > { %2175 = vst.msk [vmem:[%s3324_s11 + $0x60] sm:$0xff] %vm2162_vm5, %v2139_v22  ;;  %v2064_v63 = vpop.permute.xlu1 %2063 }
 0x3a8   : > { %2097 = vst.msk [vmem:[%s3324_s11 + $0x78] sm:$0xff] %vm2081_vm4, %v2064_v63 }
 0x3aa   : > { %v2143_v19 = vpop.permute.xlu0 %2142 }
 0x3ab   : > { %2177 = vst.msk [vmem:[%s3324_s11 + $0x70] sm:$0xff] %vm2162_vm5, %v2143_v19  ;;  %v2117_v39 = vpop.permute.xlu1 %2116  ;;  %v2668_v42 = vpop.f32.mrb[22].mxu0 }
 0x3ac   : > { %2164 = vst.msk [vmem:[%s3324_s11 + $0x8] sm:$0xff] %vm2162_vm5, %v2117_v39  ;;  %v1209_v5 = vpop.f32.mrb[23].mxu0  ;;  %v1273_v55 = vmax.f32 %v2668_v42, 0.0 }
 0x3ad   : > { %v1272_v2 = vmax.f32 %v1209_v5, 0.0 }
 0x3ae   : > { %v1902_v59 = vpop.permute.xlu0 %1901 }
 0x3af   : > { %v1963_v62 = vsel %vm1074_vm2, %v1902_v59, 0.0  ;;  %v2121_v52 = vpop.permute.xlu1 %2120  ;;  %2698 = vmatprep.mubr.msk.f32.mxu1 %vm1295_vm3, %v1272_v2 }
 0x3b0   : > { %2166 = vst.msk [vmem:[%s3324_s11 + $0x18] sm:$0xff] %vm2162_vm5, %v2121_v52  ;;  %2699 = vmatmul.mubr.msk.f32.gmra.mrb[18].mxu1 %vm1295_vm3, %v1273_v55  ;;  %1964 = vadd.xlane.f32.xlu1 %v1963_v62 }
 0x3b2   : > { %v1666_v47 = vpop.permute.xlu0 %1665 }
 0x3b3   : > { %v1721_v35 = vsel %vm1074_vm2, %v1666_v47, 0.0  ;;  %v2125_v32 = vpop.permute.xlu1 %2124 }
 0x3b4   : > { %2168 = vst.msk [vmem:[%s3324_s11 + $0x28] sm:$0xff] %vm2162_vm5, %v2125_v32  ;;  %1722 = vadd.xlane.f32.xlu1 %v1721_v35 }
 0x3b6   : > { %v1670_v58 = vpop.permute.xlu0 %1669 }
 0x3b7   : > { %v1727_v11 = vsel %vm1074_vm2, %v1670_v58, 0.0  ;;  %v2129_v33 = vpop.permute.xlu1 %2128 }
 0x3b8   : > { %2170 = vst.msk [vmem:[%s3324_s11 + $0x38] sm:$0xff] %vm2162_vm5, %v2129_v33  ;;  %1728 = vadd.xlane.f32.xlu1 %v1727_v11 }
 0x3ba   : > { %v1674_v60 = vpop.permute.xlu0 %1673 }
 0x3bb   : > { %v1733_v6 = vsel %vm1074_vm2, %v1674_v60, 0.0  ;;  %v2133_v34 = vpop.permute.xlu1 %2132 }
 0x3bc   : > { %2172 = vst.msk [vmem:[%s3324_s11 + $0x48] sm:$0xff] %vm2162_vm5, %v2133_v34  ;;  %1734 = vadd.xlane.f32.xlu1 %v1733_v6 }
 0x3be   : > { %v1678_v56 = vpop.permute.xlu0 %1677 }
 0x3bf   : > { %v1739_v36 = vsel %vm1074_vm2, %v1678_v56, 0.0  ;;  %v2137_v13 = vpop.permute.xlu1 %2136 }
 0x3c0   : > { %2174 = vst.msk [vmem:[%s3324_s11 + $0x58] sm:$0xff] %vm2162_vm5, %v2137_v13  ;;  %1740 = vadd.xlane.f32.xlu1 %v1739_v36 }
 0x3c3   : > { %v2141_v43 = vpop.permute.xlu1 %2140 }
 0x3c4   : > { %2176 = vst.msk [vmem:[%s3324_s11 + $0x68] sm:$0xff] %vm2162_vm5, %v2141_v43 }
 0x3c7   : > { %v2145_v54 = vpop.permute.xlu1 %2144 }
 0x3c8   : > { %2178 = vst.msk [vmem:[%s3324_s11 + $0x78] sm:$0xff] %vm2162_vm5, %v2145_v54 }
 0x3cb   : > { %v1668_v21 = vpop.permute.xlu1 %1667 }
 0x3cc   : > { %v1724_v0 = vsel %vm1074_vm2, %v1668_v21, 0.0 }
 0x3cd   : > { %1725 = vadd.xlane.f32.xlu0 %v1724_v0 }
 0x3cf   : > { %v1672_v25 = vpop.permute.xlu1 %1671 }
 0x3d0   : > { %v1730_v30 = vsel %vm1074_vm2, %v1672_v25, 0.0 }
 0x3d1   : > { %1731 = vadd.xlane.f32.xlu0 %v1730_v30 }
 0x3d3   : > { %v1676_v46 = vpop.permute.xlu1 %1675 }
 0x3d4   : > { %v1736_v40 = vsel %vm1074_vm2, %v1676_v46, 0.0 }
 0x3d5   : > { %1737 = vadd.xlane.f32.xlu0 %v1736_v40 }
 0x3d7   : > { %v1680_v9 = vpop.permute.xlu1 %1679 }
 0x3d8   : > { %v1742_v61 = vsel %vm1074_vm2, %v1680_v9, 0.0 }
 0x3d9   : > { %1743 = vadd.xlane.f32.xlu0 %v1742_v61 }
 0x3e0   : > { %v2671_v48 = vpop.f32.mrb[24].mxu0 }
 0x3e1   : > { %v1219_v37 = vpop.f32.mrb[25].mxu0  ;;  %v1275_v4 = vmax.f32 %v2671_v48, 0.0 }
 0x3e2   : > { %v1274_v12 = vmax.f32 %v1219_v37, 0.0 }
 0x3e4   : > { %2701 = vmatprep.mubr.msk.f32.mxu1 %vm1295_vm3, %v1274_v12 }
 0x3e5   : > { %2702 = vmatmul.mubr.msk.f32.gmra.mrb[20].mxu1 %vm1295_vm3, %v1275_v4 }
 0x3e8   : > { %v2674_v17 = vpop.f32.mrb[26].mxu0 }
 0x3e9   : > { %v1229_v57 = vpop.f32.mrb[27].mxu0  ;;  %v1277_v44 = vmax.f32 %v2674_v17, 0.0 }
 0x3ea   : > { %v1276_v53 = vmax.f32 %v1229_v57, 0.0 }
 0x3ec   : > { %2704 = vmatprep.mubr.msk.f32.mxu1 %vm1295_vm3, %v1276_v53 }
 0x3ed   : > { %2705 = vmatmul.mubr.msk.f32.gmra.mrb[22].mxu1 %vm1295_vm3, %v1277_v44 }
 0x3f2   : > { %v1923_v10 = vpop.xlane.xlu0 %1922 }
 0x3f4   : > { %v2677_v8 = vpop.f32.mrb[28].mxu0 }
 0x3f5   : > { %v1239_v7 = vpop.f32.mrb[29].mxu0  ;;  %v1279_v50 = vmax.f32 %v2677_v8, 0.0 }
 0x3f6   : > { %v1278_v28 = vmax.f32 %v1239_v7, 0.0 }
 0x3f8   : > { %2707 = vmatprep.mubr.msk.f32.mxu1 %vm1295_vm3, %v1278_v28 }
 0x3f9   : > { %2708 = vmatmul.mubr.msk.f32.gmra.mrb[24].mxu1 %vm1295_vm3, %v1279_v50 }
 0x3fa   : > { %v1932_v15 = vpop.xlane.xlu0 %1931 }
 0x3fc   : > { %v2680_v45 = vpop.f32.mrb[30].mxu0 }
 0x3fd   : > { %v1249_v22 = vpop.f32.mrb[31].mxu0  ;;  %v1281_v39 = vmax.f32 %v2680_v45, 0.0 }
 0x3fe   : > { %v1280_v63 = vmax.f32 %v1249_v22, 0.0  ;;  %v1929_v19 = vpop.xlane.xlu0 %1928 }
 0x400   : > { %2710 = vmatprep.mubr.msk.f32.mxu1 %vm1295_vm3, %v1280_v63 }
 0x401   : > { %2711 = vmatmul.mubr.msk.f32.gmra.mrb[26].mxu1 %vm1295_vm3, %v1281_v39 }
 0x402   : > { %v1938_v42 = vpop.xlane.xlu0 %1937 }
 0x406   : > { %v1944_v5 = vpop.xlane.xlu0 %1943 }
 0x408   : > { %v1926_v2 = vpop.xlane.xlu1 %1925 }
 0x40a   : > { %v1699_v55 = vpop.xlane.xlu0 %1698 }
 0x40b   : > { %v1745_v59 = vsub.f32 0.0, %v1699_v55 }
 0x40c   : > { %v1935_v62 = vpop.xlane.xlu1 %1934 }
 0x40d   : > { %v2489_v52 = vadd.f32 -8.0, %v1745_v59 }
 0x40e   : > { %v3819_v47 = vpop.xlane.xlu0 %1949 }
 0x40f   : > { %v1841_v35 = vadd.f32 %v2489_v52, %v3305_v16  ;;  %v3831_v16 = vld [vmem:[%s4189_s9] ss:$0 sm:$0xff] }
 0x410   : > { %v1702_v32 = vpop.xlane.xlu1 %1701 }
 0x411   : > { %v3822_v58 = vadd.f32 %v1923_v10, %v1841_v35  ;;  %v1746_v11 = vsub.f32 0.0, %v1702_v32 }
 0x412   : > { %v1708_v33 = vpop.xlane.xlu0 %1707 }
 0x413   : > { %v2490_v60 = vadd.f32 -8.0, %v1746_v11  ;;  %v1748_v6 = vsub.f32 0.0, %v1708_v33 }
 0x414   : > { %v1941_v34 = vpop.xlane.xlu1 %1940 }
 0x415   : > { %v1842_v56 = vadd.f32 %v2490_v60, %v3303_v14  ;;  %v2492_v36 = vadd.f32 -8.0, %v1748_v6 }
 0x416   : > { %v1705_v13 = vpop.xlane.xlu0 %1704 }
 0x417   : > { %v3825_v43 = vadd.f32 %v1926_v2, %v1842_v56  ;;  %v1844_v54 = vadd.f32 %v2492_v36, %v3307_v18  ;;  %v1747_v21 = vsub.f32 0.0, %v1705_v13 }
 0x418   : > { %v1947_v0 = vpop.xlane.xlu1 %1946 }
 0x419   : > { %v3833_v25 = vadd.f32 %v1932_v15, %v1844_v54  ;;  %v2491_v30 = vadd.f32 -8.0, %v1747_v21  ;;  %v2694_v46 = vpop.f32.mrb[14].mxu1 }
 0x41a   : > { %v3836_v40 = vadd.f32 %v2694_v46, %v3831_v16  ;;  %v1410_v14 = vpop.f32.mrb[15].mxu1  ;;  %v3838_v9 = vpop.xlane.xlu0 %1955 }
 0x41b   : > { %v1843_v61 = vadd.f32 %v2491_v30, %v3309_v20  ;;  %v3842_v18 = vadd.f32 %v3831_v16, %v1410_v14 }
 0x41c   : > { %v1953_v48 = vpop.xlane.xlu1 %1952  ;;  %2197 = vrot.lane.b32.xlu1 %v3836_v40, %s2926_s20 }
 0x41d   : > { %v3846_v37 = vadd.f32 %v1929_v19, %v1843_v61  ;;  %2195 = vrot.lane.b32.xlu0 %v3842_v18, %s2926_s20 }
 0x41e   : > { %v1714_v12 = vpop.xlane.xlu0 %1713 }
 0x41f   : > { %v1750_v4 = vsub.f32 0.0, %v1714_v12 }
 0x420   : > { %v1711_v17 = vpop.xlane.xlu1 %1710 }
 0x421   : > { %v2494_v57 = vadd.f32 -8.0, %v1750_v4  ;;  %v1749_v53 = vsub.f32 0.0, %v1711_v17 }
 0x422   : > { %v3850_v44 = vpop.xlane.xlu0 %1961 }
 0x423   : > { %v1846_v20 = vadd.f32 %v2494_v57, %v3311_v23  ;;  %v2493_v8 = vadd.f32 -8.0, %v1749_v53  ;;  %v1489_v53 = vld [vmem:[%s3892_s28] sm:$0xff] }
 0x424   : > { %v1959_v7 = vpop.xlane.xlu1 %1958 }
 0x425   : > { %v3853_v10 = vadd.f32 %v1938_v42, %v1846_v20  ;;  %v1845_v28 = vadd.f32 %v2493_v8, %v3313_v24 }
 0x426   : > { %v1720_v50 = vpop.xlane.xlu0 %1719 }
 0x427   : > { %v3856_v15 = vadd.f32 %v1935_v62, %v1845_v28  ;;  %v1752_v45 = vsub.f32 0.0, %v1720_v50  ;;  %v1490_v50 = vld [vmem:[%s3892_s28 + $0x8] sm:$0xff] }
 0x428   : > { %v1717_v22 = vpop.xlane.xlu1 %1716 }
 0x429   : > { %v2496_v63 = vadd.f32 -8.0, %v1752_v45  ;;  %v1751_v19 = vsub.f32 0.0, %v1717_v22  ;;  %v1492_v45 = vld [vmem:[%s3892_s28 + $0x18] sm:$0xff] }
 0x42b   : > { %v1848_v39 = vadd.f32 %v2496_v63, %v3316_v26  ;;  %v2495_v2 = vadd.f32 -8.0, %v1751_v19  ;;  %v1506_v63 = vsub.f32 %v1490_v50, %v3836_v40 }
 0x42d   : > { %v3859_v55 = vadd.f32 %v1944_v5, %v1848_v39  ;;  %v1847_v23 = vadd.f32 %v2495_v2, %v3318_v27 }
 0x42f   : > { %v3862_v59 = vadd.f32 %v1941_v34, %v1847_v23  ;;  %v1522_v23 = vmul.f32 %v1506_v63, %v1506_v63 }
 0x43d   : > { %v1965_v42 = vpop.xlane.xlu1 %1964 }
 0x441   : > { %v1723_v52 = vpop.xlane.xlu1 %1722 }
 0x442   : > { %v1753_v35 = vsub.f32 0.0, %v1723_v52 }
 0x444   : > { %v2497_v24 = vadd.f32 -8.0, %v1753_v35  ;;  %v1540_v35 = vsel %vm1074_vm2, %v1522_v23, 0.0  ;;  %v1985_v23 = vmul.f32 0.5, %v3822_v58 }
 0x445   : > { %v1729_v32 = vpop.xlane.xlu1 %1728 }
 0x446   : > { %v1849_v62 = vadd.f32 %v2497_v24, %v3424_v49  ;;  %v1755_v11 = vsub.f32 0.0, %v1729_v32 }
 0x448   : > { %v3865_v33 = vadd.f32 %v1947_v0, %v1849_v62  ;;  %v2499_v60 = vadd.f32 -8.0, %v1755_v11 }
 0x449   : > { %v1735_v6 = vpop.xlane.xlu1 %1734 }
 0x44a   : > { %v1851_v26 = vadd.f32 %v2499_v60, %v3471_v38  ;;  %v1757_v5 = vsub.f32 0.0, %v1735_v6  ;;  %v1491_v60 = vld [vmem:[%s3892_s28 + $0x10] sm:$0xff] }
 0x44c   : > { %v3868_v56 = vadd.f32 %v1953_v48, %v1851_v26  ;;  %v2501_v27 = vadd.f32 -8.0, %v1757_v5  ;;  %v1494_v26 = vld [vmem:[%s3892_s28 + $0x28] sm:$0xff] }
 0x44d   : > { %v1741_v34 = vpop.xlane.xlu1 %1740 }
 0x44e   : > { %v1853_v36 = vadd.f32 %v2501_v27, %v3551_v31  ;;  %v1759_v13 = vsub.f32 0.0, %v1741_v34  ;;  %v1968_v31 = vpop.xlane.xlu0 %1967 }
 0x44f   : > { %v2697_v54 = vpop.f32.mrb[16].mxu1 }
 0x450   : > { %v3871_v21 = vadd.f32 %v1959_v7, %v1853_v36  ;;  %v2503_v30 = vadd.f32 -8.0, %v1759_v13  ;;  %v1426_v49 = vadd.f32 %v2697_v54, %v3831_v16  ;;  %v1420_v0 = vpop.f32.mrb[17].mxu1  ;;  %v1505_v7 = vsub.f32 %v1489_v53, %v3842_v18 }
 0x451   : > { %v1421_v46 = vadd.f32 %v3831_v16, %v1420_v0 }
 0x452   : > { %v1855_v38 = vadd.f32 %v2503_v30, %v3686_v1  ;;  %2201 = vrot.lane.b32.xlu1 %v1426_v49, %s2926_s20  ;;  %v1521_v19 = vmul.f32 %v1505_v7, %v1505_v7  ;;  %v1508_v39 = vsub.f32 %v1492_v45, %v1426_v49  ;;  %v1496_v7 = vld [vmem:[%s3892_s28 + $0x38] sm:$0xff] }
 0x453   : > { %2199 = vrot.lane.b32.xlu0 %v1421_v46, %s2926_s20  ;;  %v1507_v6 = vsub.f32 %v1491_v60, %v1421_v46 }
 0x454   : > { %v3878_v14 = vadd.f32 %v1965_v42, %v1855_v38  ;;  %v1524_v42 = vmul.f32 %v1508_v39, %v1508_v39  ;;  %v1537_v52 = vsel %vm1074_vm2, %v1521_v19, 0.0 }
 0x455   : > { %v1523_v5 = vmul.f32 %v1507_v6, %v1507_v6 }
 0x456   : > { %v1546_v18 = vsel %vm1074_vm2, %v1524_v42, 0.0 }
 0x457   : > { %v1543_v36 = vsel %vm1074_vm2, %v1523_v5, 0.0 }
 0x45a   : > { %v3880_v61 = vpop.xlane.xlu0 %1725 }
 0x45d   : > { %v2683_v48 = vpop.f32.mrb[32].mxu0 }
 0x45e   : > { %v1259_v12 = vpop.f32.mrb[33].mxu0  ;;  %v3882_v4 = vpop.xlane.xlu0 %1731  ;;  %v1283_v57 = vmax.f32 %v2683_v48, 0.0 }
 0x45f   : > { %v1282_v17 = vmax.f32 %v1259_v12, 0.0 }
 0x461   : > { %2713 = vmatprep.mubr.msk.f32.mxu1 %vm1295_vm3, %v1282_v17 }
 0x462   : > { %2714 = vmatmul.mubr.msk.f32.gmra.mrb[28].mxu1 %vm1295_vm3, %v1283_v57  ;;  %v3886_v1 = vpop.xlane.xlu0 %1737  ;;  %v1493_v57 = vld [vmem:[%s3892_s28 + $0x20] sm:$0xff] }
 0x466   : > { %v1744_v20 = vpop.xlane.xlu0 %1743 }
 0x467   : > { %v1760_v8 = vsub.f32 0.0, %v1744_v20 }
 0x469   : > { %v2504_v28 = vadd.f32 -8.0, %v1760_v8 }
 0x46b   : > { %v1856_v22 = vadd.f32 %v2504_v28, %v3682_v29 }
 0x46d   : > { %v3900_v2 = vadd.f32 %v1968_v31, %v1856_v22 }
 0x472   : > { %1538 = vadd.xlane.f32.xlu0 %v1537_v52  ;;  %v2927_v52 = vmov 0.0  }
 0x476   : > { %1547 = vadd.xlane.f32.xlu0 %v1546_v18  ;;  %1541 = vadd.xlane.f32.xlu1 %v1540_v35  ;;  %v1986_v18 = vmul.f32 0.5, %v3825_v43  ;;  %v1988_v35 = vmul.f32 0.5, %v3833_v25 }
 0x483   : > { %v2700_v29 = vpop.f32.mrb[18].mxu1 }
 0x484   : > { %v1436_v40 = vadd.f32 %v2700_v29, %v3831_v16  ;;  %v1430_v24 = vpop.f32.mrb[19].mxu1 }
 0x485   : > { %v1431_v32 = vadd.f32 %v3831_v16, %v1430_v24  ;;  %v1495_v24 = vld [vmem:[%s3892_s28 + $0x30] sm:$0xff] }
 0x486   : > { %v1510_v27 = vsub.f32 %v1494_v26, %v1436_v40 }
 0x487   : > { %2205 = vrot.lane.b32.xlu1 %v1436_v40, %s2926_s20  ;;  %v1509_v8 = vsub.f32 %v1493_v57, %v1431_v32 }
 0x488   : > { %v1526_v34 = vmul.f32 %v1510_v27, %v1510_v27 }
 0x489   : > { %v1525_v28 = vmul.f32 %v1509_v8, %v1509_v8 }
 0x48a   : > { %v1552_v13 = vsel %vm1074_vm2, %v1526_v34, 0.0 }
 0x48b   : > { %v1549_v45 = vsel %vm1074_vm2, %v1525_v28, 0.0  ;;  %v1989_v28 = vmul.f32 0.5, %v3856_v15 }
 0x48c   : > { %2203 = vrot.lane.b32.xlu0 %v1431_v32, %s2926_s20  ;;  %v1498_v32 = vld [vmem:[%s3892_s28 + $0x48] sm:$0xff] }
 0x48e   : > { %v2198_v62 = vpop.permute.xlu1 %2197 }
 0x48f   : > { %2245 = vst.msk [vmem:[%s3324_s11 + $0x8] sm:$0xff] %vm2243_vm6, %v2198_v62  ;;  %v2196_v11 = vpop.permute.xlu0 %2195 }
 0x490   : > { %2244 = vst.msk [vmem:[%s3324_s11] sm:$0xff] %vm2243_vm6, %v2196_v11 }
 0x4ab   : > { %1544 = vadd.xlane.f32.xlu0 %v1543_v36 }
 0x4af   : > { %1553 = vadd.xlane.f32.xlu0 %v1552_v13 }
 0x4b8   : > { %v2703_v54 = vpop.f32.mrb[20].mxu1 }
 0x4b9   : > { %v1446_v30 = vadd.f32 %v2703_v54, %v3831_v16  ;;  %v1440_v49 = vpop.f32.mrb[21].mxu1  ;;  %v1987_v54 = vmul.f32 0.5, %v3846_v37 }
 0x4ba   : > { %v1441_v38 = vadd.f32 %v3831_v16, %v1440_v49  ;;  %v1990_v49 = vmul.f32 0.5, %v3853_v10 }
 0x4bb   : > { %2209 = vrot.lane.b32.xlu1 %v1446_v30, %s2926_s20  ;;  %v1512_v50 = vsub.f32 %v1496_v7, %v1446_v30 }
 0x4bc   : > { %v1511_v25 = vsub.f32 %v1495_v24, %v1441_v38 }
 0x4bd   : > { %v1528_v22 = vmul.f32 %v1512_v50, %v1512_v50 }
 0x4be   : > { %v1527_v62 = vmul.f32 %v1511_v25, %v1511_v25 }
 0x4bf   : > { %v1558_v63 = vsel %vm1074_vm2, %v1528_v22, 0.0  ;;  %v1499_v22 = vld [vmem:[%s3892_s28 + $0x50] sm:$0xff] }
 0x4c0   : > { %v2706_v0 = vpop.f32.mrb[22].mxu1  ;;  %v1555_v60 = vsel %vm1074_vm2, %v1527_v62, 0.0 }
 0x4c1   : > { %v1450_v46 = vpop.f32.mrb[23].mxu1  ;;  %v1456_v19 = vadd.f32 %v2706_v0, %v3831_v16 }
 0x4c2   : > { %v1451_v39 = vadd.f32 %v3831_v16, %v1450_v46  ;;  %v1497_v46 = vld [vmem:[%s3892_s28 + $0x40] sm:$0xff] }
 0x4c3   : > { %v1514_v11 = vsub.f32 %v1498_v32, %v1456_v19 }
 0x4c4   : > { %v2202_v31 = vpop.permute.xlu1 %2201  ;;  %v1513_v37 = vsub.f32 %v1497_v46, %v1451_v39  ;;  %v1993_v46 = vmul.f32 0.5, %v3865_v33  ;;  %v1758_v33 = vsub.f32 0.0, %v3886_v1  ;;  %v1997_v1 = vmul.f32 0.5, %v3871_v21 }
 0x4c5   : > { %2247 = vst.msk [vmem:[%s3324_s11 + $0x18] sm:$0xff] %vm2243_vm6, %v2202_v31  ;;  %2207 = vrot.lane.b32.xlu0 %v1441_v38, %s2926_s20  ;;  %v2200_v48 = vpop.permute.xlu0 %2199  ;;  %v1530_v6 = vmul.f32 %v1514_v11, %v1514_v11  ;;  %v1500_v31 = vld [vmem:[%s3892_s28 + $0x58] sm:$0xff] }
 0x4c6   : > { %2246 = vst.msk [vmem:[%s3324_s11 + $0x10] sm:$0xff] %vm2243_vm6, %v2200_v48  ;;  %v1529_v48 = vmul.f32 %v1513_v37, %v1513_v37 }
 0x4c7   : > { %v1564_v26 = vsel %vm1074_vm2, %v1530_v6, 0.0 }
 0x4c8   : > { %v1561_v10 = vsel %vm1074_vm2, %v1529_v48, 0.0  ;;  %v2502_v48 = vadd.f32 -8.0, %v1758_v33 }
 0x4cc   : > { %v2709_v12 = vpop.f32.mrb[24].mxu1 }
 0x4cd   : > { %v1460_v17 = vpop.f32.mrb[25].mxu1  ;;  %v1466_v5 = vadd.f32 %v2709_v12, %v3831_v16 }
 0x4ce   : > { %v1461_v27 = vadd.f32 %v3831_v16, %v1460_v17 }
 0x4cf   : > { %v1516_v12 = vsub.f32 %v1500_v31, %v1466_v5 }
 0x4d0   : > { %v1515_v15 = vsub.f32 %v1499_v22, %v1461_v27 }
 0x4d1   : > { %v1532_v17 = vmul.f32 %v1516_v12, %v1516_v12  ;;  %v1854_v12 = vadd.f32 %v2502_v48, %v3547_v51 }
 0x4d3   : > { %v1570_v57 = vsel %vm1074_vm2, %v1532_v17, 0.0 }
 0x4d4   : > { %v3926_v53 = vpop.f32.mrb[26].mxu1 }
 0x4d5   : > { %v3928_v20 = vpop.f32.mrb[27].mxu1  ;;  %v1476_v8 = vadd.f32 %v3926_v53, %v3831_v16 }
 0x4d6   : > { %v1471_v7 = vadd.f32 %v3831_v16, %v3928_v20 }
 0x4df   : > { %1550 = vadd.xlane.f32.xlu1 %v1549_v45  ;;  %v1992_v45 = vmul.f32 0.5, %v3859_v55  ;;  %v1531_v55 = vmul.f32 %v1515_v15, %v1515_v15 }
 0x4e1   : > { %v1567_v24 = vsel %vm1074_vm2, %v1531_v55, 0.0 }
 0x4e4   : > { %1559 = vadd.xlane.f32.xlu0 %v1558_v63 }
 0x4f0   : > { %2213 = vrot.lane.b32.xlu1 %v1456_v19, %s2926_s20  ;;  %v1501_v19 = vld [vmem:[%s3892_s28 + $0x60] sm:$0xff] }
 0x4fa   : > { %2211 = vrot.lane.b32.xlu0 %v1451_v39, %s2926_s20  ;;  %v1502_v39 = vld [vmem:[%s3892_s28 + $0x68] sm:$0xff] }
 0x4ff   : > { %v1539_v42 = vpop.xlane.xlu0 %1538 }
 0x500   : > { %2261 = vst.msk [vmem:[%s3324_s11] sm:$0xff] %vm2260_vm7, %v1539_v42 }
 0x501   : > { %2278 = vst.msk [vmem:[%s3324_s11] sm:$0xff] %vm2277_vm8, %v1985_v23  ;;  %v1517_v23 = vsub.f32 %v1501_v19, %v1471_v7 }
 0x502   : > { %2295 = vst.msk [vmem:[%s3324_s11] sm:$0xff] %vm2294_vm9, %v2927_v52 }
 0x503   : > { %v1542_v58 = vpop.xlane.xlu1 %1541  ;;  %v1548_v29 = vpop.xlane.xlu0 %1547 }
 0x504   : > { %2262 = vst.msk [vmem:[%s3324_s11 + $0x8] sm:$0xff] %vm2260_vm7, %v1542_v58  ;;  %2264 = vst.msk [vmem:[%s3324_s11 + $0x18] sm:$0xff] %vm2260_vm7, %v1548_v29  ;;  %v1503_v58 = vld [vmem:[%s3892_s28 + $0x70] sm:$0xff]  ;;  %v1504_v29 = vld [vmem:[%s3892_s28 + $0x78] sm:$0xff]  ;;  %s2864_s28 = sshll.u32 %s2928_s25, 4  ;;  %s2865_s28 = int_to_ptr.vmem [resolvable:$false] %s2864_s28 }
 0x505   : > { %2279 = vst.msk [vmem:[%s3324_s11 + $0x8] sm:$0xff] %vm2277_vm8, %v1986_v18  ;;  %2281 = vst.msk [vmem:[%s3324_s11 + $0x18] sm:$0xff] %vm2277_vm8, %v1988_v35  ;;  %v1518_v18 = vsub.f32 %v1502_v39, %v1476_v8  ;;  %s2866_s27 = scalar_lea.vmem %s2865_s28, 4096  ;;  %p2867_p0 = scmp.lt.s32.totalorder %s4126_s30, %s2865_s28 }
 0x506   : > { %2296 = vst.msk [vmem:[%s3324_s11 + $0x8] sm:$0xff] %vm2294_vm9, %v2927_v52  ;;  %2298 = vst.msk [vmem:[%s3324_s11 + $0x18] sm:$0xff] %vm2294_vm9, %v2927_v52  ;;  %p2868_p1 = scmp.lt.s32.totalorder %s2866_s27, %s2860_s21 }
 0x507   : > { %v2206_v43 = vpop.permute.xlu1 %2205  ;;  %v2204_v40 = vpop.permute.xlu0 %2203  ;;  %v1534_v25 = vmul.f32 %v1518_v18, %v1518_v18 }
 0x508   : > { %2249 = vst.msk [vmem:[%s3324_s11 + $0x28] sm:$0xff] %vm2243_vm6, %v2206_v43  ;;  %2248 = vst.msk [vmem:[%s3324_s11 + $0x20] sm:$0xff] %vm2243_vm6, %v2204_v40  ;;  %v1533_v43 = vmul.f32 %v1517_v23, %v1517_v23  ;;  %p2869_p2 = por %p2868_p1, %p2867_p0 }
 0x509   : > { %v1576_v6 = vsel %vm1074_vm2, %v1534_v25, 0.0 }
 0x50a   : > { %v1573_v11 = vsel %vm1074_vm2, %v1533_v43, 0.0  ;;  %p2870_p3 = pnand %p2869_p2, %p2863_p13 }
 0x514   : > { %1556 = vadd.xlane.f32.xlu1 %v1555_v60 }
 0x519   : > { %1565 = vadd.xlane.f32.xlu0 %v1564_v26 }
 0x525   : > { %2217 = vrot.lane.b32.xlu1 %v1466_v5, %s2926_s20  ;;  %v1754_v5 = vsub.f32 0.0, %v3880_v61 }
 0x52d   : > { %v2210_v34 = vpop.permute.xlu1 %2209 }
 0x52e   : > { %2251 = vst.msk [vmem:[%s3324_s11 + $0x38] sm:$0xff] %vm2243_vm6, %v2210_v34 }
 0x52f   : > { %2215 = vrot.lane.b32.xlu0 %v1461_v27, %s2926_s20  ;;  %v2498_v27 = vadd.f32 -8.0, %v1754_v5 }
 0x531   : > { %v1850_v34 = vadd.f32 %v2498_v27, %v3417_v41 }
 0x535   : > { %v2715_v36 = vpop.f32.mrb[28].mxu1 }
 0x536   : > { %v1480_v13 = vpop.f32.mrb[29].mxu1  ;;  %v1486_v35 = vadd.f32 %v2715_v36, %v3831_v16  ;;  %v1991_v36 = vmul.f32 0.5, %v3862_v59  ;;  %v1756_v59 = vsub.f32 0.0, %v3882_v4 }
 0x537   : > { %v1481_v42 = vadd.f32 %v3831_v16, %v1480_v13 }
 0x538   : > { %v1545_v30 = vpop.xlane.xlu0 %1544  ;;  %v1520_v32 = vsub.f32 %v1504_v29, %v1486_v35 }
 0x539   : > { %2263 = vst.msk [vmem:[%s3324_s11 + $0x10] sm:$0xff] %vm2260_vm7, %v1545_v30  ;;  %v1519_v40 = vsub.f32 %v1503_v58, %v1481_v42 }
 0x53a   : > { %2280 = vst.msk [vmem:[%s3324_s11 + $0x10] sm:$0xff] %vm2277_vm8, %v1987_v54  ;;  %v1536_v60 = vmul.f32 %v1520_v32, %v1520_v32  ;;  %v1978_v54 = vadd.f32 %v3819_v47, %v1850_v34 }
 0x53b   : > { %2297 = vst.msk [vmem:[%s3324_s11 + $0x10] sm:$0xff] %vm2294_vm9, %v2927_v52  ;;  %v1535_v62 = vmul.f32 %v1519_v40, %v1519_v40 }
 0x53c   : > { %v1554_v0 = vpop.xlane.xlu0 %1553  ;;  %v1582_v26 = vsel %vm1074_vm2, %v1536_v60, 0.0  ;;  %v1994_v30 = vmul.f32 0.5, %v1978_v54 }
 0x53d   : > { %2266 = vst.msk [vmem:[%s3324_s11 + $0x28] sm:$0xff] %vm2260_vm7, %v1554_v0  ;;  %v1579_v16 = vsel %vm1074_vm2, %v1535_v62, 0.0 }
 0x53e   : > { %2283 = vst.msk [vmem:[%s3324_s11 + $0x28] sm:$0xff] %vm2277_vm8, %v1990_v49  ;;  %v2500_v49 = vadd.f32 -8.0, %v1756_v59 }
 0x53f   : > { %2300 = vst.msk [vmem:[%s3324_s11 + $0x28] sm:$0xff] %vm2294_vm9, %v2927_v52 }
 0x540   : > { %v2208_v38 = vpop.permute.xlu0 %2207  ;;  %v1852_v0 = vadd.f32 %v2500_v49, %v3469_v3 }
 0x541   : > { %2250 = vst.msk [vmem:[%s3324_s11 + $0x30] sm:$0xff] %vm2243_vm6, %v2208_v38 }
 0x542   : > { %v1980_v38 = vadd.f32 %v3838_v9, %v1852_v0 }
 0x544   : > { %v1996_v4 = vmul.f32 0.5, %v1980_v38 }
 0x549   : > { %1562 = vadd.xlane.f32.xlu1 %v1561_v10  ;;  %v1995_v10 = vmul.f32 0.5, %v3868_v56 }
 0x54e   : > { %1571 = vadd.xlane.f32.xlu0 %v1570_v57  ;;  %v1982_v57 = vadd.f32 %v3850_v44, %v1854_v12 }
 0x550   : > { %v1998_v51 = vmul.f32 0.5, %v1982_v57 }
 0x55a   : > { %2221 = vrot.lane.b32.xlu1 %v1476_v8, %s2926_s20 }
 0x564   : > { %2219 = vrot.lane.b32.xlu0 %v1471_v7, %s2926_s20 }
 0x56c   : > { %v1551_v50 = vpop.xlane.xlu1 %1550 }
 0x56d   : > { %2265 = vst.msk [vmem:[%s3324_s11 + $0x20] sm:$0xff] %vm2260_vm7, %v1551_v50 }
 0x56e   : > { %2282 = vst.msk [vmem:[%s3324_s11 + $0x20] sm:$0xff] %vm2277_vm8, %v1989_v28  ;;  %v2000_v28 = vmul.f32 0.5, %v3900_v2 }
 0x56f   : > { %2299 = vst.msk [vmem:[%s3324_s11 + $0x20] sm:$0xff] %vm2294_vm9, %v2927_v52 }
 0x570   : > { %v2214_v53 = vpop.permute.xlu1 %2213 }
 0x571   : > { %2253 = vst.msk [vmem:[%s3324_s11 + $0x48] sm:$0xff] %vm2243_vm6, %v2214_v53  ;;  %v1560_v20 = vpop.xlane.xlu0 %1559  ;;  %v1999_v53 = vmul.f32 0.5, %v3878_v14 }
 0x572   : > { %2268 = vst.msk [vmem:[%s3324_s11 + $0x38] sm:$0xff] %vm2260_vm7, %v1560_v20 }
 0x573   : > { %2285 = vst.msk [vmem:[%s3324_s11 + $0x38] sm:$0xff] %vm2277_vm8, %v1992_v45 }
 0x574   : > { %2302 = vst.msk [vmem:[%s3324_s11 + $0x38] sm:$0xff] %vm2294_vm9, %v2927_v52 }
 0x575   : > { %v2212_v63 = vpop.permute.xlu0 %2211 }
 0x576   : > { %2252 = vst.msk [vmem:[%s3324_s11 + $0x40] sm:$0xff] %vm2243_vm6, %v2212_v63 }
 0x57e   : > { %1568 = vadd.xlane.f32.xlu1 %v1567_v24 }
 0x582   : > { %1574 = vadd.xlane.f32.xlu1 %v1573_v11 }
 0x583   : > { %1577 = vadd.xlane.f32.xlu0 %v1576_v6 }
 0x586   : > { %1580 = vadd.xlane.f32.xlu1 %v1579_v16 }
 0x587   : > { %1583 = vadd.xlane.f32.xlu0 %v1582_v26 }
 0x597   : > { %2225 = vrot.lane.b32.xlu1 %v1486_v35, %s2926_s20 }
 0x59d   : > { %2223 = vrot.lane.b32.xlu0 %v1481_v42, %s2926_s20  ;;  %s4138_s20 = scalar_lea.sflag [#allocation3], %s4197_s17 }
 0x5a1   : > { %v1557_v13 = vpop.xlane.xlu1 %1556 }
 0x5a2   : > { %2267 = vst.msk [vmem:[%s3324_s11 + $0x30] sm:$0xff] %vm2260_vm7, %v1557_v13 }
 0x5a3   : > { %2284 = vst.msk [vmem:[%s3324_s11 + $0x30] sm:$0xff] %vm2277_vm8, %v1991_v36 }
 0x5a4   : > { %2301 = vst.msk [vmem:[%s3324_s11 + $0x30] sm:$0xff] %vm2294_vm9, %v2927_v52 }
 0x5a5   : > { %v2218_v61 = vpop.permute.xlu1 %2217 }
 0x5a6   : > { %2255 = vst.msk [vmem:[%s3324_s11 + $0x58] sm:$0xff] %vm2243_vm6, %v2218_v61  ;;  %v1566_v41 = vpop.xlane.xlu0 %1565 }
 0x5a7   : > { %2270 = vst.msk [vmem:[%s3324_s11 + $0x48] sm:$0xff] %vm2260_vm7, %v1566_v41 }
 0x5a8   : > { %2287 = vst.msk [vmem:[%s3324_s11 + $0x48] sm:$0xff] %vm2277_vm8, %v1994_v30 }
 0x5a9   : > { %2304 = vst.msk [vmem:[%s3324_s11 + $0x48] sm:$0xff] %vm2294_vm9, %v2927_v52 }
 0x5aa   : > { %v2216_v47 = vpop.permute.xlu0 %2215 }
 0x5ab   : > { %2254 = vst.msk [vmem:[%s3324_s11 + $0x50] sm:$0xff] %vm2243_vm6, %v2216_v47 }
 0x5d6   : > { %v1563_v37 = vpop.xlane.xlu1 %1562 }
 0x5d7   : > { %2269 = vst.msk [vmem:[%s3324_s11 + $0x40] sm:$0xff] %vm2260_vm7, %v1563_v37 }
 0x5d8   : > { %2286 = vst.msk [vmem:[%s3324_s11 + $0x40] sm:$0xff] %vm2277_vm8, %v1993_v46 }
 0x5d9   : > { %2303 = vst.msk [vmem:[%s3324_s11 + $0x40] sm:$0xff] %vm2294_vm9, %v2927_v52 }
 0x5da   : > { %v2222_v31 = vpop.permute.xlu1 %2221 }
 0x5db   : > { %2257 = vst.msk [vmem:[%s3324_s11 + $0x68] sm:$0xff] %vm2243_vm6, %v2222_v31  ;;  %v1572_v3 = vpop.xlane.xlu0 %1571 }
 0x5dc   : > { %2272 = vst.msk [vmem:[%s3324_s11 + $0x58] sm:$0xff] %vm2260_vm7, %v1572_v3 }
 0x5dd   : > { %2289 = vst.msk [vmem:[%s3324_s11 + $0x58] sm:$0xff] %vm2277_vm8, %v1996_v4 }
 0x5de   : > { %2306 = vst.msk [vmem:[%s3324_s11 + $0x58] sm:$0xff] %vm2294_vm9, %v2927_v52 }
 0x5df   : > { %v2220_v9 = vpop.permute.xlu0 %2219 }
 0x5e0   : > { %2256 = vst.msk [vmem:[%s3324_s11 + $0x60] sm:$0xff] %vm2243_vm6, %v2220_v9 }
 0x60b   : > { %v1569_v17 = vpop.xlane.xlu1 %1568 }
 0x60c   : > { %2271 = vst.msk [vmem:[%s3324_s11 + $0x50] sm:$0xff] %vm2260_vm7, %v1569_v17 }
 0x60d   : > { %2288 = vst.msk [vmem:[%s3324_s11 + $0x50] sm:$0xff] %vm2277_vm8, %v1995_v10 }
 0x60e   : > { %2305 = vst.msk [vmem:[%s3324_s11 + $0x50] sm:$0xff] %vm2294_vm9, %v2927_v52 }
 0x60f   : > { %v1575_v8 = vpop.xlane.xlu1 %1574 }
 0x610   : > { %2273 = vst.msk [vmem:[%s3324_s11 + $0x60] sm:$0xff] %vm2260_vm7, %v1575_v8  ;;  %v1578_v56 = vpop.xlane.xlu0 %1577 }
 0x611   : > { %2290 = vst.msk [vmem:[%s3324_s11 + $0x60] sm:$0xff] %vm2277_vm8, %v1997_v1 }
 0x612   : > { %2274 = vst.msk [vmem:[%s3324_s11 + $0x68] sm:$0xff] %vm2260_vm7, %v1578_v56 }
 0x613   : > { %2307 = vst.msk [vmem:[%s3324_s11 + $0x60] sm:$0xff] %vm2294_vm9, %v2927_v52  ;;  %v1581_v44 = vpop.xlane.xlu1 %1580 }
 0x614   : > { %2291 = vst.msk [vmem:[%s3324_s11 + $0x68] sm:$0xff] %vm2277_vm8, %v1998_v51  ;;  %v1584_v21 = vpop.xlane.xlu0 %1583 }
 0x615   : > { %2308 = vst.msk [vmem:[%s3324_s11 + $0x68] sm:$0xff] %vm2294_vm9, %v2927_v52 }
 0x617   : > { %v2226_v7 = vpop.permute.xlu1 %2225 }
 0x618   : > { %2259 = vst.msk [vmem:[%s3324_s11 + $0x78] sm:$0xff] %vm2243_vm6, %v2226_v7  ;;  %v2224_v50 = vpop.permute.xlu0 %2223 }
 0x619   : > { %2276 = vst.msk [vmem:[%s3324_s11 + $0x78] sm:$0xff] %vm2260_vm7, %v1584_v21 }
 0x61a   : > { %2258 = vst.msk [vmem:[%s3324_s11 + $0x70] sm:$0xff] %vm2243_vm6, %v2224_v50 }
 0x61b   : > { %2293 = vst.msk [vmem:[%s3324_s11 + $0x78] sm:$0xff] %vm2277_vm8, %v2000_v28 }
 0x61c   : > { %2275 = vst.msk [vmem:[%s3324_s11 + $0x70] sm:$0xff] %vm2260_vm7, %v1581_v44 }
 0x61d   : > { %2310 = vst.msk [vmem:[%s3324_s11 + $0x78] sm:$0xff] %vm2294_vm9, %v2927_v52 }
 0x61e   : > { %2292 = vst.msk [vmem:[%s3324_s11 + $0x70] sm:$0xff] %vm2277_vm8, %v1999_v53 }
 0x61f   : > { %2309 = vst.msk [vmem:[%s3324_s11 + $0x70] sm:$0xff] %vm2294_vm9, %v2927_v52 }
 0x620   : > { %2873 = shalt.err (!%p2870_p3)
}
 0x621   : > { %s2874_s11 = scalar_lea.hbm %s4120_s12, 2048  ;;  %s2878_s17 = scalar_lea.hbm %s4190_s10, 6144 }
 0x622   : > { %p2875_p4 = scmp.ne.s32.totalorder %s4120_s12, %s2874_s11  ;;  %p2879_p9 = scmp.lt.u32.totalorder %s4120_s12, %s4190_s10 }
 0x623   : > { %p2880_p10 = scmp.lt.u32.totalorder %s2878_s17, %s2874_s11  ;;  %p2882_p12 = scmp.lt.u32.totalorder %s2874_s11, %s4120_s12 }
 0x624   : > { %p2876_p7 = pnand %p2875_p4, %p3023_p5 }
 0x625   : > { %p2881_p11 = por %p2880_p10, %p2879_p9 }
 0x626   : > { %p2877_p8 = pneg %p2876_p7 }
 0x627   : > { %p2883_p13 = por %p2882_p12, %p2881_p11 }
 0x629   : > { %p2884_p0 = pnand %p2883_p13, %p2877_p8 }
 0x62b   : > { %2887 = shalt.err (!%p2884_p0)
}
 0x62c   : > { %s2929_s21 = smov 128  }
 0x62d   : > { %2752 = dma.vmem_to_hbm [thread:$0]  (%p3023_p5), %s4126_s30, 2048, %s4120_s12, %s4138_s20, %s2929_s21, %s2929_s21, %s4196_s29  }
 0x62e PF: > { %p2758_p1 = scmp.ge.s32.totalorder %s2922_s16, 2  ;;  %s2340_s27 = sand.u32 1, %s2910_s13  }
 0x62f   : > { %s2341_s11 = scalar_lea.sflag [#allocation3], %s2340_s27 }
 0x630   : > { %p2755_p2 = pnand %p2758_p1, %p3027_p6 }
 0x632   : > { %2905 = dma.done.wait (!%p2755_p2), %s2341_s11, 2048  }
 0x633   : > { %2907 = vsyncadd (!%p2755_p2), %s2341_s11, 4294965248  ;;  %p20_p3 = scmp.ge.s32.totalorder %s3010_s19, 5   ;;  %s4198_s13 = smov %s2914_s14 }
 0x634   : > { %s4199_s14 = smov %s2918_s15  ;;  %s4200_s15 = smov %s3021_s22 }
 0x635   : > { %s4201_s16 = smov %s3010_s19  ;;  %22 = sbr.rel (!%p20_p3) target bundleno = 3 (0x3), region = 101 }
 0x63c   :  { %2346 = vsyncpa [#allocation3], 1 }
 0x63d   :  { %2348 = vsyncpa [#allocation3 + $0x1], 1 }

</bundles_post_ra>
